<compile_context>
chip_gen: v5e
topology: v5e:2x2
jax: 0.10.0
libtpu: 0.0.40
codegen_flags: <defaults>
</compile_context>

<pallas_src>
import functools

import jax
import jax.numpy as jnp
from jax.experimental import pallas as pl
from jax.experimental.pallas import tpu as pltpu

MAX_R = 20
DROPOUT_P = 0.5


# ----------------------------- layout helpers -----------------------------

def _round_up(x, m):
    return ((x + m - 1) // m) * m


def _layout(entries, align):
    """entries: [(name, size)] -> ({name: (offset, size)}, total_size rounded to align)."""
    offs, off = {}, 0
    for name, n in entries:
        off = _round_up(off, align)
        offs[name] = (off, int(n))
        off += int(n)
    return offs, _round_up(off, align)


def _state_layout(meta, T):
    return _layout(
        [("attn_h", meta["D"]), ("rnn1_h", meta["L"]), ("rnn2_h", meta["L"]),
         ("rnn1_c", meta["L"]), ("rnn2_c", meta["L"]), ("ctx", meta["E"]),
         ("prev_align", T), ("mels", meta["NR"]), ("stop", 1)], align=128)


def _stepin_layout(meta):
    return _layout(
        [("prenet_in", meta["n_mels"]), ("drop1", meta["P"]), ("drop2", meta["P"])],
        align=128)


def state_field(slab, lay, name):
    off, n = lay[name]
    return slab[..., off:off + n]


# ----------------------------- parameter init / pack -----------------------------

def init_decoder_params(key, n_mels, encoder_dims, decoder_dims, lstm_dims,
                        speaker_embedding_size):
    """Random params with torch layouts: Linear/RNN weights are (out_features, in_features)."""
    D, L = decoder_dims, lstm_dims
    P = 2 * D
    E = encoder_dims + speaker_embedding_size

    def nrm(k, shape, scale=0.1):
        return scale * jax.random.normal(k, shape, dtype=jnp.float32)

    ks = iter(jax.random.split(key, 32))
    nk = lambda: next(ks)
    return dict(
        fc1_w=nrm(nk(), (P, n_mels)),        fc1_b=nrm(nk(), (P,)),
        fc2_w=nrm(nk(), (P, P)),             fc2_b=nrm(nk(), (P,)),
        query_w=nrm(nk(), (D, D)),           v_w=nrm(nk(), (1, D)),
        gru_wih=nrm(nk(), (3 * D, E + P)),   gru_whh=nrm(nk(), (3 * D, D)),
        gru_bih=nrm(nk(), (3 * D,)),         gru_bhh=nrm(nk(), (3 * D,)),
        rnnin_w=nrm(nk(), (L, E + D)),       rnnin_b=nrm(nk(), (L,)),
        l1_wih=nrm(nk(), (4 * L, L)),        l1_whh=nrm(nk(), (4 * L, L)),
        l1_bih=nrm(nk(), (4 * L,)),          l1_bhh=nrm(nk(), (4 * L,)),
        l2_wih=nrm(nk(), (4 * L, L)),        l2_whh=nrm(nk(), (4 * L, L)),
        l2_bih=nrm(nk(), (4 * L,)),          l2_bhh=nrm(nk(), (4 * L,)),
        mel_w=nrm(nk(), (n_mels * MAX_R, L)),
        # stop_proj input is cat(x, context): columns [0:L] -> x, [L:L+E] -> context
        stop_w=nrm(nk(), (1, L + E)),        stop_b=nrm(nk(), (1,)),
    )


def pack_decoder_params(params, n_mels, encoder_dims, decoder_dims, lstm_dims,
                        speaker_embedding_size, r=1, param_dtype=jnp.bfloat16):
    """Transpose torch-layout weights to (in, out) and pack into a few dense slabs.

    Weight slabs default to bf16 (halves HBM->VMEM + MXU push); biases / v_w stay
    f32 and matmuls accumulate in f32.  Pass param_dtype=jnp.float32 for exact
    reference numerics.
    """
    D, L = decoder_dims, lstm_dims
    P = 2 * D
    E = encoder_dims + speaker_embedding_size
    NR = n_mels * r

    p = {k: jnp.asarray(v, jnp.float32) for k, v in params.items()}

    fc1_w, fc2_w = p["fc1_w"].T, p["fc2_w"].T              # (n_mels,P), (P,P)
    gru_wih, gru_whh = p["gru_wih"].T, p["gru_whh"].T      # (E+P,3D), (D,3D)
    q_w = p["query_w"].T                                   # (D, D)
    rnnin_w = p["rnnin_w"].T                               # (E+D, L)
    stop_w = p["stop_w"].reshape(-1)                       # (L+E,)
    mel_w = p["mel_w"].T.reshape(L, n_mels, MAX_R)[:, :, :r].reshape(L, NR)

    def make_rows(pieces, cols):
        lay, total = _layout([(k, v.shape[0]) for k, v in pieces.items()], align=16)
        slab = jnp.zeros((total, cols), jnp.float32)
        for name, arr in pieces.items():
            off, n = lay[name]
            slab = slab.at[off:off + n, :].set(arr)
        return slab, lay

    wP, wP_lay = make_rows({"fc1_w": fc1_w, "fc2_w": fc2_w}, P)
    w3D, w3D_lay = make_rows({"gru_wih_ctx": gru_wih[:E], "gru_wih_pre": gru_wih[E:],
                              "gru_whh": gru_whh}, 3 * D)
    w4L, w4L_lay = make_rows({"l1_wih": p["l1_wih"].T, "l1_whh": p["l1_whh"].T,
                              "l2_wih": p["l2_wih"].T, "l2_whh": p["l2_whh"].T}, 4 * L)

    # MXU-fused heads (concatenated here in the wrapper, not inside the kernel):
    wQR = jnp.concatenate([q_w, rnnin_w[E:]], axis=1)                   # (D, D+L)
    wCtxL = jnp.concatenate([rnnin_w[:E], stop_w[L:L + E, None]], axis=1)  # (E, L+1)
    wMel = jnp.concatenate([mel_w, stop_w[:L, None]], axis=1)           # (L, NR+1)

    vec_pieces = {
        "fc1_b": p["fc1_b"], "fc2_b": p["fc2_b"], "v_w": p["v_w"].reshape(-1),
        "gru_bih": p["gru_bih"], "gru_bhh": p["gru_bhh"], "rnnin_b": p["rnnin_b"],
        "l1_b": p["l1_bih"] + p["l1_bhh"], "l2_b": p["l2_bih"] + p["l2_bhh"],
        "stop_b": p["stop_b"],
    }
    vec_lay, vec_w = _layout([(k, v.size) for k, v in vec_pieces.items()], align=128)
    vec = jnp.zeros((1, vec_w), jnp.float32)
    for name, arr in vec_pieces.items():
        off, n = vec_lay[name]
        vec = vec.at[0, off:off + n].set(arr.reshape(-1))

    cast = lambda a: a.astype(param_dtype)
    weights = dict(wP=cast(wP), w3D=cast(w3D), w4L=cast(w4L),
                   wQR=cast(wQR), wCtxL=cast(wCtxL), wMel=cast(wMel),
                   vec=vec)                                   # biases stay f32
    meta = dict(D=D, L=L, E=E, P=P, n_mels=n_mels, r=r, NR=NR,
                wP=wP_lay, w3D=w3D_lay, w4L=w4L_lay, vec=vec_lay)
    return dict(weights=weights, meta=meta)


# ----------------------------- per-utterance constants / state -----------------------------

def make_decoder_consts(encoder_seq, encoder_seq_proj, chars):
    """Built ONCE per utterance (hoisted off the per-step path)."""
    f32 = jnp.float32
    T = encoder_seq.shape[1]
    idx = jnp.arange(T)
    shift = (idx[None, :] == idx[:, None] + 1).astype(f32)   # super-diagonal: q @ shift == right-shift
    return dict(enc_seq=jnp.asarray(encoder_seq, f32),
                enc_proj=jnp.asarray(encoder_seq_proj, f32),
                cmask=(chars != 0).astype(f32),
                shift=shift)


def pack_decoder_state(meta, T, hidden_states, cell_states, context_vec, prev_alignment):
    attn_h, rnn1_h, rnn2_h = hidden_states
    rnn1_c, rnn2_c = cell_states
    B = attn_h.shape[0]
    lay, width = _state_layout(meta, T)
    slab = jnp.zeros((B, width), jnp.float32)
    pieces = dict(attn_h=attn_h, rnn1_h=rnn1_h, rnn2_h=rnn2_h,
                  rnn1_c=rnn1_c, rnn2_c=rnn2_c,
                  ctx=jnp.reshape(context_vec, (B, meta["E"])),
                  prev_align=prev_alignment)
    for name, arr in pieces.items():
        off, n = lay[name]
        slab = slab.at[:, off:off + n].set(jnp.asarray(arr, jnp.float32).reshape(B, n))
    return slab


def init_decoder_state(meta, B, T):
    zD = jnp.zeros((B, meta["D"]), jnp.float32)
    zL = jnp.zeros((B, meta["L"]), jnp.float32)
    zE = jnp.zeros((B, meta["E"]), jnp.float32)
    align0 = jnp.zeros((B, T), jnp.float32).at[:, 0].set(1.0)   # SMA init_attention
    return pack_decoder_state(meta, T, (zD, zL, zL), (zL, zL), zE, align0)


def make_dropout_masks(key, nsteps, B, P, p=DROPOUT_P):
    """Fresh, pre-scaled PreNet dropout masks for every step (reference: training=True)."""
    if p <= 0.0:
        ones = jnp.ones((nsteps, B, P), jnp.float32)
        return ones, ones
    k1, k2 = jax.random.split(key)
    keep = 1.0 - p
    d1 = jax.random.bernoulli(k1, keep, (nsteps, B, P)).astype(jnp.float32) / keep
    d2 = jax.random.bernoulli(k2, keep, (nsteps, B, P)).astype(jnp.float32) / keep
    return d1, d2


# ----------------------------- kernel -----------------------------

def _decoder_kernel(spec,
                    state0_ref, stepin_ref, cmask_ref, vec_ref,
                    wP_ref, w3D_ref, wQR_ref, wCtxL_ref, w4L_ref, wMel_ref,
                    shift_ref, enc_seq_ref, enc_proj_ref,
                    out_ref, state_scr):
    f32 = jnp.float32
    D, L, E, P, NR = spec["D"], spec["L"], spec["E"], spec["P"], spec["NR"]
    SO, MO, VO = spec["state"], spec["stepin"], spec["vec"]
    WP, W3D, W4L = spec["wP"], spec["w3D"], spec["w4L"]
    sig = jax.nn.sigmoid

    step = pl.program_id(0)

    # state carried in VMEM scratch across grid steps; seeded from the input once
    @pl.when(step == 0)
    def _():
        state_scr[...] = state0_ref[...]

    def sl(arr, lay, name):
        off, n = lay[name]
        return arr[:, off:off + n]

    def rows(ref, lay, name):
        off, n = lay[name]
        return ref[off:off + n, :]

    def vrow(name):                      # (1, n) f32 bias / row vector
        off, n = VO[name]
        return vec_ref[:, off:off + n]

    def mm(x, w):                        # MXU matmul, bf16 weights, f32 accumulation
        return jnp.dot(x.astype(w.dtype), w, preferred_element_type=f32)

    state = state_scr[...]
    attn_h = sl(state, SO, "attn_h")
    rnn1_h = sl(state, SO, "rnn1_h")
    rnn2_h = sl(state, SO, "rnn2_h")
    rnn1_c = sl(state, SO, "rnn1_c")
    rnn2_c = sl(state, SO, "rnn2_c")
    ctx = sl(state, SO, "ctx")
    prev_a = sl(state, SO, "prev_align")

    stepv = stepin_ref[...]              # (B, step_w) for the current step
    prenet_in = sl(stepv, MO, "prenet_in")
    drop1 = sl(stepv, MO, "drop1")
    drop2 = sl(stepv, MO, "drop2")
    cmask = cmask_ref[...]

    # ---- PreNet (dropout masks are pre-scaled by 1/(1-p) in the wrapper) ----
    h = jnp.maximum(mm(prenet_in, rows(wP_ref, WP, "fc1_w")) + vrow("fc1_b"), 0.0) * drop1
    prenet_out = jnp.maximum(mm(h, rows(wP_ref, WP, "fc2_w")) + vrow("fc2_b"), 0.0) * drop2

    # ---- attention GRUCell on cat([context, prenet_out]) ----
    gi = (mm(ctx, rows(w3D_ref, W3D, "gru_wih_ctx"))
          + mm(prenet_out, rows(w3D_ref, W3D, "gru_wih_pre"))
          + vrow("gru_bih"))
    gh = mm(attn_h, rows(w3D_ref, W3D, "gru_whh")) + vrow("gru_bhh")
    r_g = sig(gi[:, 0:D] + gh[:, 0:D])
    z_g = sig(gi[:, D:2 * D] + gh[:, D:2 * D])
    n_g = jnp.tanh(gi[:, 2 * D:3 * D] + r_g * gh[:, 2 * D:3 * D])
    attn_h_new = (1.0 - z_g) * n_g + z_g * attn_h

    # ---- fused query projection + rnn_input hidden part (one MXU push) ----
    qr = mm(attn_h_new, wQR_ref[...])                                # (B, D+L)
    pq = qr[:, 0:D]
    x_h = qr[:, D:D + L]

    # ---- stepwise monotonic attention (eval branch: no sigmoid noise) ----
    tanh_term = jnp.tanh(pq[:, None, :] + enc_proj_ref[...])         # (B, T, D)
    u = jnp.sum(tanh_term * vrow("v_w")[None, :, :], axis=-1) * cmask
    p_i = sig(u)
    # alignment[:, j] = prev[:, j]*p_i[:, j] + prev[:, j-1]*(1-p_i[:, j-1])
    align = prev_a * p_i + jnp.dot(prev_a * (1.0 - p_i), shift_ref[...],
                                   preferred_element_type=f32)

    # ---- context vector: scores @ encoder_seq ----
    ctx_new = jnp.sum(align[:, :, None] * enc_seq_ref[...], axis=1)  # (B, E)

    # ---- rnn_input Linear (ctx part fused with stop_proj's ctx column) ----
    xc = mm(ctx_new, wCtxL_ref[...])                                 # (B, L+1)
    x = xc[:, 0:L] + x_h + vrow("rnnin_b")
    stop_ctx = xc[:, L:L + 1]

    def lstm(inp, hid, cell, wih, whh, b):
        g = mm(inp, wih) + mm(hid, whh) + b
        i = sig(g[:, 0:L])
        f = sig(g[:, L:2 * L])
        gg = jnp.tanh(g[:, 2 * L:3 * L])
        o = sig(g[:, 3 * L:4 * L])
        c_new = f * cell + i * gg
        return o * jnp.tanh(c_new), c_new

    # residual LSTM stack — eval branch (no zoneout: hidden = hidden_next)
    rnn1_h_new, rnn1_c_new = lstm(x, rnn1_h, rnn1_c,
                                  rows(w4L_ref, W4L, "l1_wih"),
                                  rows(w4L_ref, W4L, "l1_whh"), vrow("l1_b"))
    x = x + rnn1_h_new
    rnn2_h_new, rnn2_c_new = lstm(x, rnn2_h, rnn2_c,
                                  rows(w4L_ref, W4L, "l2_wih"),
                                  rows(w4L_ref, W4L, "l2_whh"), vrow("l2_b"))
    x = x + rnn2_h_new

    # ---- mel projection fused with stop_proj's x column ----
    ms = mm(x, wMel_ref[...])                                        # (B, NR+1)
    mels = ms[:, 0:NR]
    stop = sig(ms[:, NR:NR + 1] + stop_ctx + vrow("stop_b"))

    def put(name, val):
        off, n = SO[name]
        state_scr[:, off:off + n] = val.astype(state_scr.dtype)

    put("attn_h", attn_h_new)
    put("rnn1_h", rnn1_h_new)
    put("rnn2_h", rnn2_h_new)
    put("rnn1_c", rnn1_c_new)
    put("rnn2_c", rnn2_c_new)
    put("ctx", ctx_new)
    put("prev_align", align)
    put("mels", mels)
    put("stop", stop)

    # per-step snapshot (one lane-dense writeback per step)
    out_ref[...] = state_scr[...]


# ----------------------------- jitted core wrappers -----------------------------

def make_decoder_fns(meta):
    """Returns jitted {'decode': multi-step fused, 'step': single-step} functions."""
    step_lay, step_w = _stepin_layout(meta)

    def _core(weights, consts, state_slab, prenet_steps, drop1_steps, drop2_steps):
        f32 = jnp.float32
        nsteps, B, _ = prenet_steps.shape
        T = consts["enc_seq"].shape[1]
        state_lay, state_w = _state_layout(meta, T)

        stepin = jnp.zeros((nsteps, B, step_w), f32)
        for name, val in (("prenet_in", prenet_steps),
                          ("drop1", drop1_steps), ("drop2", drop2_steps)):
            off, n = step_lay[name]
            stepin = stepin.at[:, :, off:off + n].set(
                jnp.asarray(val, f32).reshape(nsteps, B, n))

        spec = dict(D=meta["D"], L=meta["L"], E=meta["E"], P=meta["P"], NR=meta["NR"],
                    state=state_lay, stepin=step_lay, vec=meta["vec"],
                    wP=meta["wP"], w3D=meta["w3D"], w4L=meta["w4L"])

        const2 = lambda s: (0, 0)
        const3 = lambda s: (0, 0, 0)
        snaps = pl.pallas_call(
            functools.partial(_decoder_kernel, spec),
            grid=(nsteps,),
            in_specs=[
                pl.BlockSpec((B, state_w), const2),                   # initial state (resident)
                pl.BlockSpec((None, B, step_w), lambda s: (s, 0, 0)),  # per-step slab
                pl.BlockSpec(consts["cmask"].shape, const2),
                pl.BlockSpec(weights["vec"].shape, const2),
                pl.BlockSpec(weights["wP"].shape, const2),
                pl.BlockSpec(weights["w3D"].shape, const2),
                pl.BlockSpec(weights["wQR"].shape, const2),
                pl.BlockSpec(weights["wCtxL"].shape, const2),
                pl.BlockSpec(weights["w4L"].shape, const2),
                pl.BlockSpec(weights["wMel"].shape, const2),
                pl.BlockSpec(consts["shift"].shape, const2),
                pl.BlockSpec(consts["enc_seq"].shape, const3),
                pl.BlockSpec(consts["enc_proj"].shape, const3),
            ],
            out_specs=pl.BlockSpec((None, B, state_w), lambda s: (s, 0, 0)),
            out_shape=jax.ShapeDtypeStruct((nsteps, B, state_w), jnp.float32),
            scratch_shapes=[pltpu.VMEM((B, state_w), jnp.float32)],
            compiler_params=pltpu.CompilerParams(
                dimension_semantics=("arbitrary",)),
        )(state_slab, stepin, consts["cmask"], weights["vec"], weights["wP"],
          weights["w3D"], weights["wQR"], weights["wCtxL"], weights["w4L"],
          weights["wMel"], consts["shift"], consts["enc_seq"], consts["enc_proj"])
        return snaps                                               # (nsteps, B, state_w)

    def _step(weights, consts, state_slab, prenet_in, drop1, drop2):
        return _core(weights, consts, state_slab,
                     prenet_in[None], drop1[None], drop2[None])[0]

    return dict(decode=jax.jit(_core), step=jax.jit(_step))


def decoder_step(packed, fns, consts, prenet_in, hidden_states, cell_states,
                 context_vec, t, dropout_key, prev_alignment=None,
                 dropout_p=DROPOUT_P, dropout_masks=None):
    """Compatibility API == one call of Decoder.forward (eval branches)."""
    meta = packed["meta"]
    B = prenet_in.shape[0]
    T = consts["enc_seq"].shape[1]
    state_lay, _ = _state_layout(meta, T)

    if t == 0 or prev_alignment is None:
        prev_alignment = jnp.zeros((B, T), jnp.float32).at[:, 0].set(1.0)
    state = pack_decoder_state(meta, T, hidden_states, cell_states,
                               context_vec, prev_alignment)

    if dropout_masks is None:
        d1, d2 = make_dropout_masks(dropout_key, 1, B, meta["P"], dropout_p)
        drop1, drop2 = d1[0], d2[0]
    else:
        drop1, drop2 = dropout_masks

    new_slab = fns["step"](packed["weights"], consts, state,
                           jnp.reshape(prenet_in, (B, meta["n_mels"])), drop1, drop2)

    gf = lambda name: state_field(new_slab, state_lay, name)
    mels = gf("mels").reshape(B, meta["n_mels"], meta["r"])
    align = gf("prev_align")
    scores = align[:, None, :]
    hidden_states = (gf("attn_h"), gf("rnn1_h"), gf("rnn2_h"))
    cell_states = (gf("rnn1_c"), gf("rnn2_c"))
    context_vec = gf("ctx")
    stop_tokens = gf("stop")
    return mels, scores, hidden_states, cell_states, context_vec, stop_tokens, new_slab


# ----------------------------- demo -----------------------------

if __name__ == "__main__":
    B, T = 2, 8
    n_mels = 16
    encoder_dims = 32
    decoder_dims = 32
    lstm_dims = 64
    speaker_embedding_size = 16
    E = encoder_dims + speaker_embedding_size
    P = 2 * decoder_dims

    key = jax.random.PRNGKey(0)
    kp, k0, k1, k2, kd, kf = jax.random.split(key, 6)
    params = init_decoder_params(kp, n_mels, encoder_dims, decoder_dims,
                                 lstm_dims, speaker_embedding_size)
    packed = pack_decoder_params(params, n_mels, encoder_dims, decoder_dims,
                                 lstm_dims, speaker_embedding_size, r=1,
                                 param_dtype=jnp.bfloat16)
    meta, weights = packed["meta"], packed["weights"]
    fns = make_decoder_fns(meta)

    encoder_seq = jax.random.normal(k0, (B, T, E), jnp.float32)
    encoder_seq_proj = jax.random.normal(k1, (B, T, decoder_dims), jnp.float32)
    prenet_in = jax.random.normal(k2, (B, n_mels), jnp.float32)
    # second batch element has two padding chars (id 0) at the end
    chars = jnp.concatenate([jnp.ones((B, T - 2), jnp.int32),
                             jnp.array([[1, 1], [0, 0]], jnp.int32)], axis=1)
    consts = make_decoder_consts(encoder_seq, encoder_seq_proj, chars)

    zD = jnp.zeros((B, decoder_dims), jnp.float32)
    zL = jnp.zeros((B, lstm_dims), jnp.float32)
    context_vec = jnp.zeros((B, E), jnp.float32)

    # ---- single-step path (== module.forward), step 0 then step 1 ----
    outs = decoder_step(packed, fns, consts, prenet_in, (zD, zL, zL), (zL, zL),
                        context_vec, t=0, dropout_key=jax.random.fold_in(kd, 0))
    mels, scores, hidden_states, cell_states, context_vec, stop_tokens, _ = outs
    jax.tree_util.tree_map(jax.block_until_ready, outs)

    assert mels.shape == (B, n_mels, 1)
    assert scores.shape == (B, 1, T)
    assert hidden_states[0].shape == (B, decoder_dims)
    assert hidden_states[1].shape == (B, lstm_dims)
    assert cell_states[0].shape == (B, lstm_dims)
    assert context_vec.shape == (B, E)
    assert stop_tokens.shape == (B, 1)
    assert bool(jnp.isfinite(mels).all())
    assert bool(jnp.isfinite(scores).all())
    assert bool(jnp.isfinite(stop_tokens).all())

    outs2 = decoder_step(packed, fns, consts, mels[:, :, 0], hidden_states,
                         cell_states, context_vec, t=1,
                         dropout_key=jax.random.fold_in(kd, 1),
                         prev_alignment=scores[:, 0, :])
    jax.tree_util.tree_map(jax.block_until_ready, outs2)
    assert outs2[0].shape == (B, n_mels, 1)
    assert bool(jnp.isfinite(outs2[0]).all())

    # ---- fused multi-step decode (weights/encoder VMEM-resident, state in scratch) ----
    nsteps = 4
    prenet_steps = jax.random.normal(kf, (nsteps, B, n_mels), jnp.float32)
    drop1s, drop2s = make_dropout_masks(kd, nsteps, B, P, DROPOUT_P)
    state0 = init_decoder_state(meta, B, T)

    snaps_fused = fns["decode"](weights, consts, state0, prenet_steps, drop1s, drop2s)
    snaps_fused = jax.block_until_ready(snaps_fused)

    state_lay, state_w = _state_layout(meta, T)
    assert snaps_fused.shape == (nsteps, B, state_w)
    mels_fused = state_field(snaps_fused, state_lay, "mels").reshape(nsteps, B, n_mels, 1)
    aligns_fused = state_field(snaps_fused, state_lay, "prev_align")
    stops_fused = state_field(snaps_fused, state_lay, "stop")
    assert bool(jnp.isfinite(mels_fused).all())
    assert bool(jnp.isfinite(aligns_fused).all())
    assert bool(jnp.isfinite(stops_fused).all())

    # cross-check: fused grid decode == sequentially threading the state slab
    slab = state0
    seq_snaps = []
    for s in range(nsteps):
        slab = fns["step"](weights, consts, slab, prenet_steps[s], drop1s[s], drop2s[s])
        seq_snaps.append(slab)
    snaps_seq = jax.block_until_ready(jnp.stack(seq_snaps))
    assert bool(jnp.allclose(snaps_fused, snaps_seq, rtol=1e-4, atol=1e-4))

    print("KERNEL_OK")
</pallas_src>

<mosaic_0001>
module attributes {stable_mosaic.version = 11 : i64} {
  func.func @_decoder_kernel(%arg0: i32, %arg1: memref<2x1152xf32, #tpu.memory_space<vmem>>, %arg2: memref<1x2x384xf32, #tpu.memory_space<vmem>>, %arg3: memref<2x8xf32, #tpu.memory_space<vmem>>, %arg4: memref<1x1408xf32, #tpu.memory_space<vmem>>, %arg5: memref<80x64xbf16, #tpu.memory_space<vmem>>, %arg6: memref<144x96xbf16, #tpu.memory_space<vmem>>, %arg7: memref<32x96xbf16, #tpu.memory_space<vmem>>, %arg8: memref<48x65xbf16, #tpu.memory_space<vmem>>, %arg9: memref<256x256xbf16, #tpu.memory_space<vmem>>, %arg10: memref<64x17xbf16, #tpu.memory_space<vmem>>, %arg11: memref<8x8xf32, #tpu.memory_space<vmem>>, %arg12: memref<2x8x48xf32, #tpu.memory_space<vmem>>, %arg13: memref<2x8x32xf32, #tpu.memory_space<vmem>>, %arg14: memref<1x2x1152xf32, #tpu.memory_space<vmem>>, %arg15: memref<2x1152xf32, #tpu.memory_space<vmem>>) attributes {dimension_semantics = [#tpu.dimension_semantics<arbitrary>], iteration_bounds = array<i64: 1>, scalar_prefetch = 0 : i64, scratch_operands = 1 : i64, tpu.core_type = #tpu.core_type<tc>, window_params = [{pipeline_mode = #tpu.pipeline_mode<synchronous>, transform_indices = @transform_0, window_bounds = array<i64: 2, 1152>}, {transform_indices = @transform_1, window_bounds = array<i64: 1, 2, 384>}, {pipeline_mode = #tpu.pipeline_mode<synchronous>, transform_indices = @transform_2, window_bounds = array<i64: 2, 8>}, {pipeline_mode = #tpu.pipeline_mode<synchronous>, transform_indices = @transform_3, window_bounds = array<i64: 1, 1408>}, {pipeline_mode = #tpu.pipeline_mode<synchronous>, transform_indices = @transform_4, window_bounds = array<i64: 80, 64>}, {pipeline_mode = #tpu.pipeline_mode<synchronous>, transform_indices = @transform_5, window_bounds = array<i64: 144, 96>}, {pipeline_mode = #tpu.pipeline_mode<synchronous>, transform_indices = @transform_6, window_bounds = array<i64: 32, 96>}, {pipeline_mode = #tpu.pipeline_mode<synchronous>, transform_indices = @transform_7, window_bounds = array<i64: 48, 65>}, {pipeline_mode = #tpu.pipeline_mode<synchronous>, transform_indices = @transform_8, window_bounds = array<i64: 256, 256>}, {pipeline_mode = #tpu.pipeline_mode<synchronous>, transform_indices = @transform_9, window_bounds = array<i64: 64, 17>}, {pipeline_mode = #tpu.pipeline_mode<synchronous>, transform_indices = @transform_10, window_bounds = array<i64: 8, 8>}, {pipeline_mode = #tpu.pipeline_mode<synchronous>, transform_indices = @transform_11, window_bounds = array<i64: 2, 8, 48>}, {pipeline_mode = #tpu.pipeline_mode<synchronous>, transform_indices = @transform_12, window_bounds = array<i64: 2, 8, 32>}, {transform_indices = @transform_13, window_bounds = array<i64: 1, 2, 1152>}]} {
    %c0_i32 = arith.constant 0 : i32
    %0 = arith.cmpi eq, %arg0, %c0_i32 : i32
    %1 = arith.extui %0 : i1 to i32
    %c0_i32_0 = arith.constant 0 : i32
    %2 = arith.cmpi ne, %1, %c0_i32_0 : i32
    scf.if %2 {
      %c0_94 = arith.constant 0 : index
      %c0_95 = arith.constant 0 : index
      %218 = vector.load %arg1[%c0_94, %c0_95] : memref<2x1152xf32, #tpu.memory_space<vmem>>, vector<2x1152xf32>
      %c0_96 = arith.constant 0 : index
      %c0_97 = arith.constant 0 : index
      %219 = vector.load %arg15[%c0_96, %c0_97] : memref<2x1152xf32, #tpu.memory_space<vmem>>, vector<2x1152xf32>
      tpu.vector_store %arg15[%c0_96, %c0_97], %218 {strides = array<i32>} : memref<2x1152xf32, #tpu.memory_space<vmem>>, vector<2x1152xf32>,
    } else {
    }
    %c0 = arith.constant 0 : index
    %c0_1 = arith.constant 0 : index
    %3 = vector.load %arg15[%c0, %c0_1] : memref<2x1152xf32, #tpu.memory_space<vmem>>, vector<2x1152xf32>
    %4 = vector.extract_strided_slice %3 {offsets = [0, 0], sizes = [2, 32], strides = [1, 1]} : vector<2x1152xf32> to vector<2x32xf32>
    %5 = vector.extract_strided_slice %3 {offsets = [0, 128], sizes = [2, 64], strides = [1, 1]} : vector<2x1152xf32> to vector<2x64xf32>
    %6 = vector.extract_strided_slice %3 {offsets = [0, 256], sizes = [2, 64], strides = [1, 1]} : vector<2x1152xf32> to vector<2x64xf32>
    %7 = vector.extract_strided_slice %3 {offsets = [0, 384], sizes = [2, 64], strides = [1, 1]} : vector<2x1152xf32> to vector<2x64xf32>
    %8 = vector.extract_strided_slice %3 {offsets = [0, 512], sizes = [2, 64], strides = [1, 1]} : vector<2x1152xf32> to vector<2x64xf32>
    %9 = vector.extract_strided_slice %3 {offsets = [0, 640], sizes = [2, 48], strides = [1, 1]} : vector<2x1152xf32> to vector<2x48xf32>
    %10 = vector.extract_strided_slice %3 {offsets = [0, 768], sizes = [2, 8], strides = [1, 1]} : vector<2x1152xf32> to vector<2x8xf32>
    %c0_2 = arith.constant 0 : index
    %c0_3 = arith.constant 0 : index
    %c0_4 = arith.constant 0 : index
    %11 = vector.load %arg2[%c0_2, %c0_3, %c0_4] : memref<1x2x384xf32, #tpu.memory_space<vmem>>, vector<1x2x384xf32>
    %12 = vector.shape_cast %11 : vector<1x2x384xf32> to vector<2x384xf32>
    %13 = vector.extract_strided_slice %12 {offsets = [0, 0], sizes = [2, 16], strides = [1, 1]} : vector<2x384xf32> to vector<2x16xf32>
    %14 = vector.extract_strided_slice %12 {offsets = [0, 128], sizes = [2, 64], strides = [1, 1]} : vector<2x384xf32> to vector<2x64xf32>
    %15 = vector.extract_strided_slice %12 {offsets = [0, 256], sizes = [2, 64], strides = [1, 1]} : vector<2x384xf32> to vector<2x64xf32>
    %c0_5 = arith.constant 0 : index
    %c0_6 = arith.constant 0 : index
    %16 = vector.load %arg3[%c0_5, %c0_6] : memref<2x8xf32, #tpu.memory_space<vmem>>, vector<2x8xf32>
    %c0_7 = arith.constant 0 : index
    %c0_8 = arith.constant 0 : index
    %17 = vector.load %arg5[%c0_7, %c0_8] : memref<80x64xbf16, #tpu.memory_space<vmem>>, vector<16x64xbf16>
    %18 = arith.truncf %13 : vector<2x16xf32> to vector<2x16xbf16>
    %cst = arith.constant dense<0.000000e+00> : vector<2x64xf32>
    %19 = tpu.matmul %18, %17, %cst {dimension_numbers = #tpu.dot_dimension_numbers<[1], [0], [0], [1], [0, 0, 1, 1], [], []>} : vector<2x16xbf16>, vector<16x64xbf16>, vector<2x64xf32> -> vector<2x64xf32>
    %c0_9 = arith.constant 0 : index
    %c0_10 = arith.constant 0 : index
    %20 = vector.load %arg4[%c0_9, %c0_10] : memref<1x1408xf32, #tpu.memory_space<vmem>>, vector<1x64xf32>
    %21 = vector.broadcast %20 : vector<1x64xf32> to vector<2x64xf32>
    %22 = arith.addf %19, %21 : vector<2x64xf32>
    %cst_11 = arith.constant 0.000000e+00 : f32
    %23 = vector.broadcast %cst_11 : f32 to vector<2x64xf32>
    %24 = arith.maximumf %22, %23 : vector<2x64xf32>
    %25 = arith.mulf %24, %14 : vector<2x64xf32>
    %c16 = arith.constant 16 : index
    %c0_12 = arith.constant 0 : index
    %26 = vector.load %arg5[%c16, %c0_12] : memref<80x64xbf16, #tpu.memory_space<vmem>>, vector<64x64xbf16>
    %27 = arith.truncf %25 : vector<2x64xf32> to vector<2x64xbf16>
    %cst_13 = arith.constant dense<0.000000e+00> : vector<2x64xf32>
    %28 = tpu.matmul %27, %26, %cst_13 {dimension_numbers = #tpu.dot_dimension_numbers<[1], [0], [0], [1], [0, 0, 1, 1], [], []>} : vector<2x64xbf16>, vector<64x64xbf16>, vector<2x64xf32> -> vector<2x64xf32>
    %c0_14 = arith.constant 0 : index
    %c128 = arith.constant 128 : index
    %29 = vector.load %arg4[%c0_14, %c128] : memref<1x1408xf32, #tpu.memory_space<vmem>>, vector<1x64xf32>
    %30 = vector.broadcast %29 : vector<1x64xf32> to vector<2x64xf32>
    %31 = arith.addf %28, %30 : vector<2x64xf32>
    %cst_15 = arith.constant 0.000000e+00 : f32
    %32 = vector.broadcast %cst_15 : f32 to vector<2x64xf32>
    %33 = arith.maximumf %31, %32 : vector<2x64xf32>
    %34 = arith.mulf %33, %15 : vector<2x64xf32>
    %c0_16 = arith.constant 0 : index
    %c0_17 = arith.constant 0 : index
    %35 = vector.load %arg6[%c0_16, %c0_17] : memref<144x96xbf16, #tpu.memory_space<vmem>>, vector<48x96xbf16>
    %36 = arith.truncf %9 : vector<2x48xf32> to vector<2x48xbf16>
    %cst_18 = arith.constant dense<0.000000e+00> : vector<2x96xf32>
    %37 = tpu.matmul %36, %35, %cst_18 {dimension_numbers = #tpu.dot_dimension_numbers<[1], [0], [0], [1], [0, 0, 1, 1], [], []>} : vector<2x48xbf16>, vector<48x96xbf16>, vector<2x96xf32> -> vector<2x96xf32>
    %c48 = arith.constant 48 : index
    %c0_19 = arith.constant 0 : index
    %38 = vector.load %arg6[%c48, %c0_19] : memref<144x96xbf16, #tpu.memory_space<vmem>>, vector<64x96xbf16>
    %39 = arith.truncf %34 : vector<2x64xf32> to vector<2x64xbf16>
    %cst_20 = arith.constant dense<0.000000e+00> : vector<2x96xf32>
    %40 = tpu.matmul %39, %38, %cst_20 {dimension_numbers = #tpu.dot_dimension_numbers<[1], [0], [0], [1], [0, 0, 1, 1], [], []>} : vector<2x64xbf16>, vector<64x96xbf16>, vector<2x96xf32> -> vector<2x96xf32>
    %41 = arith.addf %37, %40 : vector<2x96xf32>
    %c0_21 = arith.constant 0 : index
    %c384 = arith.constant 384 : index
    %42 = vector.load %arg4[%c0_21, %c384] : memref<1x1408xf32, #tpu.memory_space<vmem>>, vector<1x96xf32>
    %43 = vector.broadcast %42 : vector<1x96xf32> to vector<2x96xf32>
    %44 = arith.addf %41, %43 : vector<2x96xf32>
    %c112 = arith.constant 112 : index
    %c0_22 = arith.constant 0 : index
    %45 = vector.load %arg6[%c112, %c0_22] : memref<144x96xbf16, #tpu.memory_space<vmem>>, vector<32x96xbf16>
    %46 = arith.truncf %4 : vector<2x32xf32> to vector<2x32xbf16>
    %cst_23 = arith.constant dense<0.000000e+00> : vector<2x96xf32>
    %47 = tpu.matmul %46, %45, %cst_23 {dimension_numbers = #tpu.dot_dimension_numbers<[1], [0], [0], [1], [0, 0, 1, 1], [], []>} : vector<2x32xbf16>, vector<32x96xbf16>, vector<2x96xf32> -> vector<2x96xf32>
    %c0_24 = arith.constant 0 : index
    %c512 = arith.constant 512 : index
    %48 = vector.load %arg4[%c0_24, %c512] : memref<1x1408xf32, #tpu.memory_space<vmem>>, vector<1x96xf32>
    %49 = vector.broadcast %48 : vector<1x96xf32> to vector<2x96xf32>
    %50 = arith.addf %47, %49 : vector<2x96xf32>
    %51 = vector.extract_strided_slice %44 {offsets = [0, 0], sizes = [2, 32], strides = [1, 1]} : vector<2x96xf32> to vector<2x32xf32>
    %52 = vector.extract_strided_slice %50 {offsets = [0, 0], sizes = [2, 32], strides = [1, 1]} : vector<2x96xf32> to vector<2x32xf32>
    %53 = arith.addf %51, %52 : vector<2x32xf32>
    %54 = arith.negf %53 : vector<2x32xf32>
    %55 = math.exp %54 : vector<2x32xf32>
    %cst_25 = arith.constant 1.000000e+00 : f32
    %56 = vector.broadcast %cst_25 : f32 to vector<2x32xf32>
    %57 = arith.addf %56, %55 : vector<2x32xf32>
    %58 = arith.divf %56, %57 : vector<2x32xf32>
    %59 = vector.extract_strided_slice %44 {offsets = [0, 32], sizes = [2, 32], strides = [1, 1]} : vector<2x96xf32> to vector<2x32xf32>
    %60 = vector.extract_strided_slice %50 {offsets = [0, 32], sizes = [2, 32], strides = [1, 1]} : vector<2x96xf32> to vector<2x32xf32>
    %61 = arith.addf %59, %60 : vector<2x32xf32>
    %62 = arith.negf %61 : vector<2x32xf32>
    %63 = math.exp %62 : vector<2x32xf32>
    %cst_26 = arith.constant 1.000000e+00 : f32
    %64 = vector.broadcast %cst_26 : f32 to vector<2x32xf32>
    %65 = arith.addf %64, %63 : vector<2x32xf32>
    %66 = arith.divf %64, %65 : vector<2x32xf32>
    %67 = vector.extract_strided_slice %44 {offsets = [0, 64], sizes = [2, 32], strides = [1, 1]} : vector<2x96xf32> to vector<2x32xf32>
    %68 = vector.extract_strided_slice %50 {offsets = [0, 64], sizes = [2, 32], strides = [1, 1]} : vector<2x96xf32> to vector<2x32xf32>
    %69 = arith.mulf %58, %68 : vector<2x32xf32>
    %70 = arith.addf %67, %69 : vector<2x32xf32>
    %71 = math.tanh %70 : vector<2x32xf32>
    %cst_27 = arith.constant 1.000000e+00 : f32
    %72 = vector.broadcast %cst_27 : f32 to vector<2x32xf32>
    %73 = arith.subf %72, %66 : vector<2x32xf32>
    %74 = arith.mulf %73, %71 : vector<2x32xf32>
    %75 = arith.mulf %66, %4 : vector<2x32xf32>
    %76 = arith.addf %74, %75 : vector<2x32xf32>
    %c0_28 = arith.constant 0 : index
    %c0_29 = arith.constant 0 : index
    %77 = vector.load %arg7[%c0_28, %c0_29] : memref<32x96xbf16, #tpu.memory_space<vmem>>, vector<32x96xbf16>
    %78 = arith.truncf %76 : vector<2x32xf32> to vector<2x32xbf16>
    %cst_30 = arith.constant dense<0.000000e+00> : vector<2x96xf32>
    %79 = tpu.matmul %78, %77, %cst_30 {dimension_numbers = #tpu.dot_dimension_numbers<[1], [0], [0], [1], [0, 0, 1, 1], [], []>} : vector<2x32xbf16>, vector<32x96xbf16>, vector<2x96xf32> -> vector<2x96xf32>
    %80 = vector.extract_strided_slice %79 {offsets = [0, 0], sizes = [2, 32], strides = [1, 1]} : vector<2x96xf32> to vector<2x32xf32>
    %81 = vector.extract_strided_slice %79 {offsets = [0, 32], sizes = [2, 64], strides = [1, 1]} : vector<2x96xf32> to vector<2x64xf32>
    %82 = vector.shape_cast %80 : vector<2x32xf32> to vector<2x1x32xf32>
    %c0_31 = arith.constant 0 : index
    %c0_32 = arith.constant 0 : index
    %c0_33 = arith.constant 0 : index
    %83 = vector.load %arg13[%c0_31, %c0_32, %c0_33] : memref<2x8x32xf32, #tpu.memory_space<vmem>>, vector<2x8x32xf32>
    %84 = vector.broadcast %82 : vector<2x1x32xf32> to vector<2x8x32xf32>
    %85 = arith.addf %84, %83 : vector<2x8x32xf32>
    %86 = math.tanh %85 : vector<2x8x32xf32>
    %c0_34 = arith.constant 0 : index
    %c256 = arith.constant 256 : index
    %87 = vector.load %arg4[%c0_34, %c256] : memref<1x1408xf32, #tpu.memory_space<vmem>>, vector<1x32xf32>
    %88 = vector.shape_cast %87 : vector<1x32xf32> to vector<1x1x32xf32>
    %89 = vector.broadcast %88 : vector<1x1x32xf32> to vector<2x8x32xf32>
    %90 = arith.mulf %86, %89 : vector<2x8x32xf32>
    %cst_35 = arith.constant dense<0.000000e+00> : vector<2x8xf32>
    %91 = vector.multi_reduction <add>, %90, %cst_35 [2] : vector<2x8x32xf32> to vector<2x8xf32>
    %92 = arith.mulf %91, %16 : vector<2x8xf32>
    %93 = arith.negf %92 : vector<2x8xf32>
    %94 = math.exp %93 : vector<2x8xf32>
    %cst_36 = arith.constant 1.000000e+00 : f32
    %95 = vector.broadcast %cst_36 : f32 to vector<2x8xf32>
    %96 = arith.addf %95, %94 : vector<2x8xf32>
    %97 = arith.divf %95, %96 : vector<2x8xf32>
    %98 = arith.mulf %10, %97 : vector<2x8xf32>
    %cst_37 = arith.constant 1.000000e+00 : f32
    %99 = vector.broadcast %cst_37 : f32 to vector<2x8xf32>
    %100 = arith.subf %99, %97 : vector<2x8xf32>
    %101 = arith.mulf %10, %100 : vector<2x8xf32>
    %c0_38 = arith.constant 0 : index
    %c0_39 = arith.constant 0 : index
    %102 = vector.load %arg11[%c0_38, %c0_39] : memref<8x8xf32, #tpu.memory_space<vmem>>, vector<8x8xf32>
    %cst_40 = arith.constant dense<0.000000e+00> : vector<2x8xf32>
    %103 = tpu.matmul %101, %102, %cst_40 {dimension_numbers = #tpu.dot_dimension_numbers<[1], [0], [0], [1], [0, 0, 1, 1], [], []>} : vector<2x8xf32>, vector<8x8xf32>, vector<2x8xf32> -> vector<2x8xf32>
    %104 = arith.addf %98, %103 : vector<2x8xf32>
    %105 = vector.shape_cast %104 : vector<2x8xf32> to vector<2x8x1xf32>
    %c0_41 = arith.constant 0 : index
    %c0_42 = arith.constant 0 : index
    %c0_43 = arith.constant 0 : index
    %106 = vector.load %arg12[%c0_41, %c0_42, %c0_43] : memref<2x8x48xf32, #tpu.memory_space<vmem>>, vector<2x8x48xf32>
    %107 = vector.broadcast %105 : vector<2x8x1xf32> to vector<2x8x48xf32>
    %108 = arith.mulf %107, %106 : vector<2x8x48xf32>
    %cst_44 = arith.constant dense<0.000000e+00> : vector<2x48xf32>
    %109 = vector.multi_reduction <add>, %108, %cst_44 [1] : vector<2x8x48xf32> to vector<2x48xf32>
    %c0_45 = arith.constant 0 : index
    %c0_46 = arith.constant 0 : index
    %110 = vector.load %arg8[%c0_45, %c0_46] : memref<48x65xbf16, #tpu.memory_space<vmem>>, vector<48x65xbf16>
    %111 = arith.truncf %109 : vector<2x48xf32> to vector<2x48xbf16>
    %cst_47 = arith.constant dense<0.000000e+00> : vector<2x65xf32>
    %112 = tpu.matmul %111, %110, %cst_47 {dimension_numbers = #tpu.dot_dimension_numbers<[1], [0], [0], [1], [0, 0, 1, 1], [], []>} : vector<2x48xbf16>, vector<48x65xbf16>, vector<2x65xf32> -> vector<2x65xf32>
    %113 = vector.extract_strided_slice %112 {offsets = [0, 0], sizes = [2, 64], strides = [1, 1]} : vector<2x65xf32> to vector<2x64xf32>
    %114 = arith.addf %113, %81 : vector<2x64xf32>
    %c0_48 = arith.constant 0 : index
    %c640 = arith.constant 640 : index
    %115 = vector.load %arg4[%c0_48, %c640] : memref<1x1408xf32, #tpu.memory_space<vmem>>, vector<1x64xf32>
    %116 = vector.broadcast %115 : vector<1x64xf32> to vector<2x64xf32>
    %117 = arith.addf %114, %116 : vector<2x64xf32>
    %118 = vector.extract_strided_slice %112 {offsets = [0, 64], sizes = [2, 1], strides = [1, 1]} : vector<2x65xf32> to vector<2x1xf32>
    %c0_49 = arith.constant 0 : index
    %c0_50 = arith.constant 0 : index
    %119 = vector.load %arg9[%c0_49, %c0_50] : memref<256x256xbf16, #tpu.memory_space<vmem>>, vector<64x256xbf16>
    %c64 = arith.constant 64 : index
    %c0_51 = arith.constant 0 : index
    %120 = vector.load %arg9[%c64, %c0_51] : memref<256x256xbf16, #tpu.memory_space<vmem>>, vector<64x256xbf16>
    %c0_52 = arith.constant 0 : index
    %c768 = arith.constant 768 : index
    %121 = vector.load %arg4[%c0_52, %c768] : memref<1x1408xf32, #tpu.memory_space<vmem>>, vector<1x256xf32>
    %122 = arith.truncf %117 : vector<2x64xf32> to vector<2x64xbf16>
    %cst_53 = arith.constant dense<0.000000e+00> : vector<2x256xf32>
    %123 = tpu.matmul %122, %119, %cst_53 {dimension_numbers = #tpu.dot_dimension_numbers<[1], [0], [0], [1], [0, 0, 1, 1], [], []>} : vector<2x64xbf16>, vector<64x256xbf16>, vector<2x256xf32> -> vector<2x256xf32>
    %124 = arith.truncf %5 : vector<2x64xf32> to vector<2x64xbf16>
    %cst_54 = arith.constant dense<0.000000e+00> : vector<2x256xf32>
    %125 = tpu.matmul %124, %120, %cst_54 {dimension_numbers = #tpu.dot_dimension_numbers<[1], [0], [0], [1], [0, 0, 1, 1], [], []>} : vector<2x64xbf16>, vector<64x256xbf16>, vector<2x256xf32> -> vector<2x256xf32>
    %126 = arith.addf %123, %125 : vector<2x256xf32>
    %127 = vector.broadcast %121 : vector<1x256xf32> to vector<2x256xf32>
    %128 = arith.addf %126, %127 : vector<2x256xf32>
    %129 = vector.extract_strided_slice %128 {offsets = [0, 0], sizes = [2, 64], strides = [1, 1]} : vector<2x256xf32> to vector<2x64xf32>
    %130 = arith.negf %129 : vector<2x64xf32>
    %131 = math.exp %130 : vector<2x64xf32>
    %cst_55 = arith.constant 1.000000e+00 : f32
    %132 = vector.broadcast %cst_55 : f32 to vector<2x64xf32>
    %133 = arith.addf %132, %131 : vector<2x64xf32>
    %134 = arith.divf %132, %133 : vector<2x64xf32>
    %135 = vector.extract_strided_slice %128 {offsets = [0, 64], sizes = [2, 64], strides = [1, 1]} : vector<2x256xf32> to vector<2x64xf32>
    %136 = arith.negf %135 : vector<2x64xf32>
    %137 = math.exp %136 : vector<2x64xf32>
    %cst_56 = arith.constant 1.000000e+00 : f32
    %138 = vector.broadcast %cst_56 : f32 to vector<2x64xf32>
    %139 = arith.addf %138, %137 : vector<2x64xf32>
    %140 = arith.divf %138, %139 : vector<2x64xf32>
    %141 = vector.extract_strided_slice %128 {offsets = [0, 128], sizes = [2, 64], strides = [1, 1]} : vector<2x256xf32> to vector<2x64xf32>
    %142 = math.tanh %141 : vector<2x64xf32>
    %143 = vector.extract_strided_slice %128 {offsets = [0, 192], sizes = [2, 64], strides = [1, 1]} : vector<2x256xf32> to vector<2x64xf32>
    %144 = arith.negf %143 : vector<2x64xf32>
    %145 = math.exp %144 : vector<2x64xf32>
    %cst_57 = arith.constant 1.000000e+00 : f32
    %146 = vector.broadcast %cst_57 : f32 to vector<2x64xf32>
    %147 = arith.addf %146, %145 : vector<2x64xf32>
    %148 = arith.divf %146, %147 : vector<2x64xf32>
    %149 = arith.mulf %140, %7 : vector<2x64xf32>
    %150 = arith.mulf %134, %142 : vector<2x64xf32>
    %151 = arith.addf %149, %150 : vector<2x64xf32>
    %152 = math.tanh %151 : vector<2x64xf32>
    %153 = arith.mulf %148, %152 : vector<2x64xf32>
    %154 = arith.addf %117, %153 : vector<2x64xf32>
    %c128_58 = arith.constant 128 : index
    %c0_59 = arith.constant 0 : index
    %155 = vector.load %arg9[%c128_58, %c0_59] : memref<256x256xbf16, #tpu.memory_space<vmem>>, vector<64x256xbf16>
    %c192 = arith.constant 192 : index
    %c0_60 = arith.constant 0 : index
    %156 = vector.load %arg9[%c192, %c0_60] : memref<256x256xbf16, #tpu.memory_space<vmem>>, vector<64x256xbf16>
    %c0_61 = arith.constant 0 : index
    %c1024 = arith.constant 1024 : index
    %157 = vector.load %arg4[%c0_61, %c1024] : memref<1x1408xf32, #tpu.memory_space<vmem>>, vector<1x256xf32>
    %158 = arith.truncf %154 : vector<2x64xf32> to vector<2x64xbf16>
    %cst_62 = arith.constant dense<0.000000e+00> : vector<2x256xf32>
    %159 = tpu.matmul %158, %155, %cst_62 {dimension_numbers = #tpu.dot_dimension_numbers<[1], [0], [0], [1], [0, 0, 1, 1], [], []>} : vector<2x64xbf16>, vector<64x256xbf16>, vector<2x256xf32> -> vector<2x256xf32>
    %160 = arith.truncf %6 : vector<2x64xf32> to vector<2x64xbf16>
    %cst_63 = arith.constant dense<0.000000e+00> : vector<2x256xf32>
    %161 = tpu.matmul %160, %156, %cst_63 {dimension_numbers = #tpu.dot_dimension_numbers<[1], [0], [0], [1], [0, 0, 1, 1], [], []>} : vector<2x64xbf16>, vector<64x256xbf16>, vector<2x256xf32> -> vector<2x256xf32>
    %162 = arith.addf %159, %161 : vector<2x256xf32>
    %163 = vector.broadcast %157 : vector<1x256xf32> to vector<2x256xf32>
    %164 = arith.addf %162, %163 : vector<2x256xf32>
    %165 = vector.extract_strided_slice %164 {offsets = [0, 0], sizes = [2, 64], strides = [1, 1]} : vector<2x256xf32> to vector<2x64xf32>
    %166 = arith.negf %165 : vector<2x64xf32>
    %167 = math.exp %166 : vector<2x64xf32>
    %cst_64 = arith.constant 1.000000e+00 : f32
    %168 = vector.broadcast %cst_64 : f32 to vector<2x64xf32>
    %169 = arith.addf %168, %167 : vector<2x64xf32>
    %170 = arith.divf %168, %169 : vector<2x64xf32>
    %171 = vector.extract_strided_slice %164 {offsets = [0, 64], sizes = [2, 64], strides = [1, 1]} : vector<2x256xf32> to vector<2x64xf32>
    %172 = arith.negf %171 : vector<2x64xf32>
    %173 = math.exp %172 : vector<2x64xf32>
    %cst_65 = arith.constant 1.000000e+00 : f32
    %174 = vector.broadcast %cst_65 : f32 to vector<2x64xf32>
    %175 = arith.addf %174, %173 : vector<2x64xf32>
    %176 = arith.divf %174, %175 : vector<2x64xf32>
    %177 = vector.extract_strided_slice %164 {offsets = [0, 128], sizes = [2, 64], strides = [1, 1]} : vector<2x256xf32> to vector<2x64xf32>
    %178 = math.tanh %177 : vector<2x64xf32>
    %179 = vector.extract_strided_slice %164 {offsets = [0, 192], sizes = [2, 64], strides = [1, 1]} : vector<2x256xf32> to vector<2x64xf32>
    %180 = arith.negf %179 : vector<2x64xf32>
    %181 = math.exp %180 : vector<2x64xf32>
    %cst_66 = arith.constant 1.000000e+00 : f32
    %182 = vector.broadcast %cst_66 : f32 to vector<2x64xf32>
    %183 = arith.addf %182, %181 : vector<2x64xf32>
    %184 = arith.divf %182, %183 : vector<2x64xf32>
    %185 = arith.mulf %176, %8 : vector<2x64xf32>
    %186 = arith.mulf %170, %178 : vector<2x64xf32>
    %187 = arith.addf %185, %186 : vector<2x64xf32>
    %188 = math.tanh %187 : vector<2x64xf32>
    %189 = arith.mulf %184, %188 : vector<2x64xf32>
    %190 = arith.addf %154, %189 : vector<2x64xf32>
    %c0_67 = arith.constant 0 : index
    %c0_68 = arith.constant 0 : index
    %191 = vector.load %arg10[%c0_67, %c0_68] : memref<64x17xbf16, #tpu.memory_space<vmem>>, vector<64x17xbf16>
    %192 = arith.truncf %190 : vector<2x64xf32> to vector<2x64xbf16>
    %cst_69 = arith.constant dense<0.000000e+00> : vector<2x17xf32>
    %193 = tpu.matmul %192, %191, %cst_69 {dimension_numbers = #tpu.dot_dimension_numbers<[1], [0], [0], [1], [0, 0, 1, 1], [], []>} : vector<2x64xbf16>, vector<64x17xbf16>, vector<2x17xf32> -> vector<2x17xf32>
    %194 = vector.extract_strided_slice %193 {offsets = [0, 0], sizes = [2, 16], strides = [1, 1]} : vector<2x17xf32> to vector<2x16xf32>
    %195 = vector.extract_strided_slice %193 {offsets = [0, 16], sizes = [2, 1], strides = [1, 1]} : vector<2x17xf32> to vector<2x1xf32>
    %196 = arith.addf %195, %118 : vector<2x1xf32>
    %c0_70 = arith.constant 0 : index
    %c1280 = arith.constant 1280 : index
    %197 = vector.load %arg4[%c0_70, %c1280] : memref<1x1408xf32, #tpu.memory_space<vmem>>, vector<1x1xf32>
    %198 = vector.broadcast %197 : vector<1x1xf32> to vector<2x1xf32>
    %199 = arith.addf %196, %198 : vector<2x1xf32>
    %200 = arith.negf %199 : vector<2x1xf32>
    %201 = math.exp %200 : vector<2x1xf32>
    %cst_71 = arith.constant 1.000000e+00 : f32
    %202 = vector.broadcast %cst_71 : f32 to vector<2x1xf32>
    %203 = arith.addf %202, %201 : vector<2x1xf32>
    %204 = arith.divf %202, %203 : vector<2x1xf32>
    %c0_72 = arith.constant 0 : index
    %c0_73 = arith.constant 0 : index
    %205 = vector.load %arg15[%c0_72, %c0_73] : memref<2x1152xf32, #tpu.memory_space<vmem>>, vector<2x32xf32>
    tpu.vector_store %arg15[%c0_72, %c0_73], %76 {strides = array<i32>} : memref<2x1152xf32, #tpu.memory_space<vmem>>, vector<2x32xf32>,
    %c0_74 = arith.constant 0 : index
    %c128_75 = arith.constant 128 : index
    %206 = vector.load %arg15[%c0_74, %c128_75] : memref<2x1152xf32, #tpu.memory_space<vmem>>, vector<2x64xf32>
    tpu.vector_store %arg15[%c0_74, %c128_75], %153 {strides = array<i32>} : memref<2x1152xf32, #tpu.memory_space<vmem>>, vector<2x64xf32>,
    %c0_76 = arith.constant 0 : index
    %c256_77 = arith.constant 256 : index
    %207 = vector.load %arg15[%c0_76, %c256_77] : memref<2x1152xf32, #tpu.memory_space<vmem>>, vector<2x64xf32>
    tpu.vector_store %arg15[%c0_76, %c256_77], %189 {strides = array<i32>} : memref<2x1152xf32, #tpu.memory_space<vmem>>, vector<2x64xf32>,
    %c0_78 = arith.constant 0 : index
    %c384_79 = arith.constant 384 : index
    %208 = vector.load %arg15[%c0_78, %c384_79] : memref<2x1152xf32, #tpu.memory_space<vmem>>, vector<2x64xf32>
    tpu.vector_store %arg15[%c0_78, %c384_79], %151 {strides = array<i32>} : memref<2x1152xf32, #tpu.memory_space<vmem>>, vector<2x64xf32>,
    %c0_80 = arith.constant 0 : index
    %c512_81 = arith.constant 512 : index
    %209 = vector.load %arg15[%c0_80, %c512_81] : memref<2x1152xf32, #tpu.memory_space<vmem>>, vector<2x64xf32>
    tpu.vector_store %arg15[%c0_80, %c512_81], %187 {strides = array<i32>} : memref<2x1152xf32, #tpu.memory_space<vmem>>, vector<2x64xf32>,
    %c0_82 = arith.constant 0 : index
    %c640_83 = arith.constant 640 : index
    %210 = vector.load %arg15[%c0_82, %c640_83] : memref<2x1152xf32, #tpu.memory_space<vmem>>, vector<2x48xf32>
    tpu.vector_store %arg15[%c0_82, %c640_83], %109 {strides = array<i32>} : memref<2x1152xf32, #tpu.memory_space<vmem>>, vector<2x48xf32>,
    %c0_84 = arith.constant 0 : index
    %c768_85 = arith.constant 768 : index
    %211 = vector.load %arg15[%c0_84, %c768_85] : memref<2x1152xf32, #tpu.memory_space<vmem>>, vector<2x8xf32>
    tpu.vector_store %arg15[%c0_84, %c768_85], %104 {strides = array<i32>} : memref<2x1152xf32, #tpu.memory_space<vmem>>, vector<2x8xf32>,
    %c0_86 = arith.constant 0 : index
    %c896 = arith.constant 896 : index
    %212 = vector.load %arg15[%c0_86, %c896] : memref<2x1152xf32, #tpu.memory_space<vmem>>, vector<2x16xf32>
    tpu.vector_store %arg15[%c0_86, %c896], %194 {strides = array<i32>} : memref<2x1152xf32, #tpu.memory_space<vmem>>, vector<2x16xf32>,
    %c0_87 = arith.constant 0 : index
    %c1024_88 = arith.constant 1024 : index
    %213 = vector.load %arg15[%c0_87, %c1024_88] : memref<2x1152xf32, #tpu.memory_space<vmem>>, vector<2x1xf32>
    tpu.vector_store %arg15[%c0_87, %c1024_88], %204 {strides = array<i32>} : memref<2x1152xf32, #tpu.memory_space<vmem>>, vector<2x1xf32>,
    %c0_89 = arith.constant 0 : index
    %c0_90 = arith.constant 0 : index
    %214 = vector.load %arg15[%c0_89, %c0_90] : memref<2x1152xf32, #tpu.memory_space<vmem>>, vector<2x1152xf32>
    %c0_91 = arith.constant 0 : index
    %c0_92 = arith.constant 0 : index
    %c0_93 = arith.constant 0 : index
    %215 = vector.load %arg14[%c0_91, %c0_92, %c0_93] : memref<1x2x1152xf32, #tpu.memory_space<vmem>>, vector<1x2x1152xf32>
    %216 = vector.shape_cast %215 : vector<1x2x1152xf32> to vector<2x1152xf32>
    %217 = vector.shape_cast %214 : vector<2x1152xf32> to vector<1x2x1152xf32>
    tpu.vector_store %arg14[%c0_91, %c0_92, %c0_93], %217 {strides = array<i32>} : memref<1x2x1152xf32, #tpu.memory_space<vmem>>, vector<1x2x1152xf32>,
    return
  }
  func.func @transform_0(%arg0: i32) -> (i32, i32) {
    %c0_i32 = arith.constant 0 : i32
    %c0_i32_0 = arith.constant 0 : i32
    %c0_i32_1 = arith.constant 0 : i32
    return %c0_i32, %c0_i32_0 : i32, i32
  }
  func.func @transform_1(%arg0: i32) -> (i32, i32, i32) {
    %c0_i32 = arith.constant 0 : i32
    %c0_i32_0 = arith.constant 0 : i32
    %c0_i32_1 = arith.constant 0 : i32
    return %arg0, %c0_i32, %c0_i32_0 : i32, i32, i32
  }
  func.func @transform_2(%arg0: i32) -> (i32, i32) {
    %c0_i32 = arith.constant 0 : i32
    %c0_i32_0 = arith.constant 0 : i32
    %c0_i32_1 = arith.constant 0 : i32
    return %c0_i32, %c0_i32_0 : i32, i32
  }
  func.func @transform_3(%arg0: i32) -> (i32, i32) {
    %c0_i32 = arith.constant 0 : i32
    %c0_i32_0 = arith.constant 0 : i32
    %c0_i32_1 = arith.constant 0 : i32
    return %c0_i32, %c0_i32_0 : i32, i32
  }
  func.func @transform_4(%arg0: i32) -> (i32, i32) {
    %c0_i32 = arith.constant 0 : i32
    %c0_i32_0 = arith.constant 0 : i32
    %c0_i32_1 = arith.constant 0 : i32
    return %c0_i32, %c0_i32_0 : i32, i32
  }
  func.func @transform_5(%arg0: i32) -> (i32, i32) {
    %c0_i32 = arith.constant 0 : i32
    %c0_i32_0 = arith.constant 0 : i32
    %c0_i32_1 = arith.constant 0 : i32
    return %c0_i32, %c0_i32_0 : i32, i32
  }
  func.func @transform_6(%arg0: i32) -> (i32, i32) {
    %c0_i32 = arith.constant 0 : i32
    %c0_i32_0 = arith.constant 0 : i32
    %c0_i32_1 = arith.constant 0 : i32
    return %c0_i32, %c0_i32_0 : i32, i32
  }
  func.func @transform_7(%arg0: i32) -> (i32, i32) {
    %c0_i32 = arith.constant 0 : i32
    %c0_i32_0 = arith.constant 0 : i32
    %c0_i32_1 = arith.constant 0 : i32
    return %c0_i32, %c0_i32_0 : i32, i32
  }
  func.func @transform_8(%arg0: i32) -> (i32, i32) {
    %c0_i32 = arith.constant 0 : i32
    %c0_i32_0 = arith.constant 0 : i32
    %c0_i32_1 = arith.constant 0 : i32
    return %c0_i32, %c0_i32_0 : i32, i32
  }
  func.func @transform_9(%arg0: i32) -> (i32, i32) {
    %c0_i32 = arith.constant 0 : i32
    %c0_i32_0 = arith.constant 0 : i32
    %c0_i32_1 = arith.constant 0 : i32
    return %c0_i32, %c0_i32_0 : i32, i32
  }
  func.func @transform_10(%arg0: i32) -> (i32, i32) {
    %c0_i32 = arith.constant 0 : i32
    %c0_i32_0 = arith.constant 0 : i32
    %c0_i32_1 = arith.constant 0 : i32
    return %c0_i32, %c0_i32_0 : i32, i32
  }
  func.func @transform_11(%arg0: i32) -> (i32, i32, i32) {
    %c0_i32 = arith.constant 0 : i32
    %c0_i32_0 = arith.constant 0 : i32
    %c0_i32_1 = arith.constant 0 : i32
    %c0_i32_2 = arith.constant 0 : i32
    return %c0_i32, %c0_i32_0, %c0_i32_1 : i32, i32, i32
  }
  func.func @transform_12(%arg0: i32) -> (i32, i32, i32) {
    %c0_i32 = arith.constant 0 : i32
    %c0_i32_0 = arith.constant 0 : i32
    %c0_i32_1 = arith.constant 0 : i32
    %c0_i32_2 = arith.constant 0 : i32
    return %c0_i32, %c0_i32_0, %c0_i32_1 : i32, i32, i32
  }
  func.func @transform_13(%arg0: i32) -> (i32, i32, i32) {
    %c0_i32 = arith.constant 0 : i32
    %c0_i32_0 = arith.constant 0 : i32
    %c0_i32_1 = arith.constant 0 : i32
    return %arg0, %c0_i32, %c0_i32_0 : i32, i32, i32
  }
}

</mosaic_0001>

<bundles_post_ra>
// kernel: _step.1
= control target key start
LH: loop header
LB: loop body
LE: loop exit
PB: predicated region body
PF: predicated region fallthrough
CT: control target
= control target key end

     0   :  { %18 = vsyncpa [#allocation4], 0  ;;  %s2241_s0 = inlined_call_operand.vmem [shape: f32[2,1152], index: 0, kind: input, shape index: {}]   ;;  %s2242_s1 = inlined_call_operand.vmem [shape: f32[1,2,384], index: 1, kind: input, shape index: {}]   ;;  %s2243_s2 = inlined_call_operand.vmem [shape: f32[2,8], index: 2, kind: input, shape index: {}]   ;;  %s2244_s3 = inlined_call_operand.hbm [shape: f32[1,1408], index: 3, kind: input, shape index: {}]   ;;  %s2245_s4 = inlined_call_operand.vmem [shape: bf16[80,64], index: 4, kind: input, shape index: {}]   ;;  %s2246_s5 = inlined_call_operand.vmem [shape: bf16[144,96], index: 5, kind: input, shape index: {}]   ;;  %s2247_s6 = inlined_call_operand.hbm [shape: bf16[32,96], index: 6, kind: input, shape index: {}]   ;;  %s2248_s7 = inlined_call_operand.hbm [shape: bf16[48,65], index: 7, kind: input, shape index: {}]   ;;  %s2249_s8 = inlined_call_operand.hbm [shape: bf16[256,256], index: 8, kind: input, shape index: {}]   ;;  %s2250_s9 = inlined_call_operand.vmem [shape: bf16[64,17], index: 9, kind: input, shape index: {}]   ;;  %s2251_s10 = inlined_call_operand.hbm [shape: f32[8,8], index: 10, kind: input, shape index: {}]   ;;  %s2252_s11 = inlined_call_operand.hbm [shape: f32[2,8,48], index: 11, kind: input, shape index: {}]   ;;  %s2253_s12 = inlined_call_operand.hbm [shape: f32[2,8,32], index: 12, kind: input, shape index: {}]   ;;  %s2254_s13 = inlined_call_operand.hbm [shape: f32[1,2,1152], index: 13, kind: output, shape index: {}]  }
   0x1   :  { %19 = vsyncpa [#allocation7], 0 }
   0x2   :  { %20 = vsyncpa [#allocation10], 0 }
   0x3   :  { %21 = vsyncpa [#allocation13], 0  ;;  %s48_s27 = sshll.u32 %s2247_s6, 4  ;;  %s49_s27 = int_to_ptr.hbm [resolvable:$true] %s48_s27 }
   0x4   :  { %22 = vsyncpa [#allocation5], 0  ;;  %s1934_s28 = smov [#allocation6]   ;;  %s74_s15 = sshll.u32 %s2249_s8, 4  ;;  %s75_s15 = int_to_ptr.hbm [resolvable:$true] %s74_s15 }
   0x5   :  { %s50_s29 = sshll.u32 %s1934_s28, 4  ;;  %s1935_s16 = smov 64   ;;  %s51_s29 = int_to_ptr.vmem [resolvable:$true] %s50_s29 }
   0x6   :  { %s1936_s17 = smov 4   ;;  %s1937_s18 = smov [#allocation9]  }
   0x7   :  { %56 = dma.hbm_to_vmem [thread:$0]  %s49_s27, 256, %s51_s29, [#allocation7], %s1935_s16, %s1935_s16, %s1936_s17  }
   0x8   :  { %s76_s19 = sshll.u32 %s1937_s18, 4  ;;  %s1938_s6 = smov 128   ;;  %s77_s19 = int_to_ptr.vmem [resolvable:$true] %s76_s19 }
   0x9   :  { %s1939_s20 = smov 8   ;;  %s100_s8 = sshll.u32 %s2252_s11, 4  ;;  %s101_s8 = int_to_ptr.hbm [resolvable:$true] %s100_s8 }
   0xa   :  { %82 = dma.hbm_to_vmem [thread:$0]  %s75_s15, 4096, %s77_s19, [#allocation10], %s1938_s6, %s1938_s6, %s1939_s20  }
   0xb   :  { %s1940_s23 = smov [#allocation12]   ;;  %s34_s27 = sshll.u32 %s2244_s3, 4  ;;  %s35_s27 = int_to_ptr.hbm [resolvable:$true] %s34_s27 }
   0xc   :  { %s102_s24 = sshll.u32 %s1940_s23, 4  ;;  %s1941_s28 = smov [#allocation3]   ;;  %s103_s24 = int_to_ptr.vmem [resolvable:$true] %s102_s24 }
   0xd   :  { %108 = dma.hbm_to_vmem [thread:$0]  %s101_s8, 256, %s103_s24, [#allocation13], %s1938_s6, %s1938_s6, %s1939_s20  }
   0xe   :  { %s36_s29 = sshll.u32 %s1941_s28, 4  ;;  %s61_s15 = sshll.u32 %s2248_s7, 4  ;;  %s37_s29 = int_to_ptr.vmem [resolvable:$true] %s36_s29  ;;  %s62_s15 = int_to_ptr.hbm [resolvable:$true] %s61_s15 }
   0xf   :  { %39 = dma.hbm_to_vmem [thread:$0]  %s35_s27, 176, %s37_s29, [#allocation4]  }
  0x10   :  { %s90_s19 = sshll.u32 %s2251_s10, 4  ;;  %s1942_s21 = smov [#allocation8]   ;;  %s91_s19 = int_to_ptr.hbm [resolvable:$true] %s90_s19 }
  0x11   :  { %s63_s3 = sshll.u32 %s1942_s21, 4  ;;  %s1943_s22 = smov [#allocation11]   ;;  %s64_s3 = int_to_ptr.vmem [resolvable:$true] %s63_s3 }
  0x12   :  { %69 = dma.hbm_to_vmem [thread:$0]  %s62_s15, 384, %s64_s3, [#allocation7], %s1935_s16, %s1935_s16, %s1936_s17  }
  0x13   :  { %s92_s8 = sshll.u32 %s1943_s22, 4  ;;  %s113_s7 = sshll.u32 %s2253_s12, 4  ;;  %s93_s8 = int_to_ptr.vmem [resolvable:$true] %s92_s8  ;;  %s114_s7 = int_to_ptr.hbm [resolvable:$true] %s113_s7 }
  0x14   :  { %95 = dma.hbm_to_vmem [thread:$0]  %s91_s19, 128, %s93_s8, [#allocation10]  }
  0x15   :  { %s1944_s25 = smov [#allocation14]  }
  0x16   :  { %s115_s26 = sshll.u32 %s1944_s25, 4  ;;  %s116_s26 = int_to_ptr.vmem [resolvable:$true] %s115_s26 }
  0x17   :  { %121 = dma.hbm_to_vmem [thread:$0]  %s114_s7, 256, %s116_s26, [#allocation13], %s1938_s6, %s1938_s6, %s1939_s20  }
  0x18   :  { %1924 = dma.done.wait [#allocation4], 176  }
  0x19   :  { %1925 = vsyncadd [#allocation4], 4294967120 }
  0x1a   :  { %1926 = dma.done.wait [#allocation7], 640  }
  0x1b   :  { %1927 = vsyncadd [#allocation7], 4294966656 }
  0x1c   :  { %1928 = dma.done.wait [#allocation10], 4224  }
  0x1d   :  { %1929 = vsyncadd [#allocation10], 4294963072 }
  0x1e   :  { %1930 = dma.done.wait [#allocation13], 512  }
  0x1f   :  { %1931 = vsyncadd [#allocation13], 4294966784  ;;  %v1601_v0 = vld [vmem:[%s2245_s4] sm:$0xff]  ;;  %v2069_v2 = vld [vmem:[%s2241_s0 + $0x8] sm:$0xff]  ;;  %vm178_vm0 = vcmask 130048   ;;  %vm381_vm1 = vcmask 261120  }
  0x20   :  { %v2064_v1 = vld [vmem:[%s2241_s0] sm:$0xff]  ;;  %189 = vmatpush.bf16.msra.mxu0 %v1601_v0  ;;  %159 = vst [vmem:[#allocation2 + $0x8] sm:$0xff] %v2069_v2  ;;  %v1604_v6 = vld [vmem:[%s2245_s4 + $0x18] sm:$0xff]  ;;  %v1603_v10 = vld [vmem:[%s2245_s4 + $0x10] sm:$0xff]  ;;  %vm238_vm2 = vcmask 523264   ;;  %vm338_vm3 = vcmask 392192  }
  0x21   :  { %158 = vst [vmem:[#allocation2] sm:$0xff] %v2064_v1  ;;  %v163_v3 = vld [vmem:[%s2242_s1] sm:$0x3f]  ;;  %v1602_v11 = vld [vmem:[%s2245_s4 + $0x8] sm:$0xff]  ;;  %v1608_v13 = vld [vmem:[%s2246_s5 + $0x10] sm:$0xff]  ;;  %v364_v18 = vpack.c.bf16 %v2064_v1, %v2064_v1  ;;  %s1946_s14 = smov 32  }
  0x22   :  { %v1605_v4 = vld [vmem:[%s2245_s4 + $0x20] sm:$0xff]  ;;  %v167_v5 = vpack.c.bf16 %v163_v3, %v163_v3  ;;  %197 = vst [vmem:[#allocation1] ss:$4 sm:$0xff] %v163_v3  ;;  %v1612_v14 = vld [vmem:[%s2246_s5 + $0x30] sm:$0xff]  ;;  %v1613_v15 = vld [vmem:[%s2246_s5 + $0x38] sm:$0xff]  ;;  %347 = vmatpush.bf16.msra.mxu3 %v1608_v13  ;;  %s1949_s8 = smov 16  }
  0x23   :  { %246 = vmatpush.bf16.msra.mxu1 %v1605_v4  ;;  %v1614_v12 = vld [vmem:[%s2246_s5 + $0x40] sm:$0xff]  ;;  %v1607_v16 = vld [vmem:[%s2246_s5 + $0x8] sm:$0xff]  ;;  %311 = vmatpush.bf16.msra.mxu2 %v1612_v14  ;;  %v1679_v20 = vld [vmem:[#allocation3] ss:$0 sm:$0xff]  ;;  %s1951_s7 = smov [#allocation15]   ;;  %s1343_s10 = sshll.u32 %s2254_s13, 4  ;;  %s1344_s10 = int_to_ptr.hbm [resolvable:$true] %s1343_s10 }
  0x24   :  { %1360 = vmatmul.msk.bf16.vlgmr.msra.gmra.mxu0 %vm178_vm0, %v167_v5  ;;  %v1611_v17 = vld [vmem:[%s2246_s5 + $0x28] sm:$0xff]  ;;  %v1606_v19 = vld [vmem:[%s2246_s5] sm:$0xff]  ;;  %v1609_v29 = vld [vmem:[%s2246_s5 + $0x18] sm:$0xff]  ;;  %vm597_vm0 = vcmask 1041409   ;;  %s1341_s25 = sshll.u32 %s1951_s7, 4  ;;  %s1342_s25 = int_to_ptr.vmem [resolvable:$true] %s1341_s25 }
  0x25   :  { %391 = vmatpush.bf16.msrb.mxu0 %v1614_v12  ;;  %v1610_v28 = vld [vmem:[%s2246_s5 + $0x20] sm:$0xff]  ;;  %v1681_v30 = vld [vmem:[#allocation3 + $0x4] ss:$0 sm:$0xff]  ;;  %v1680_v34 = vld [vmem:[#allocation3 + $0x1] ss:$0 sm:$0xff]  ;;  %s1945_s5 = smov 96  }
  0x26   :  { %348 = vmatpush.bf16.msra.mxu3 %v1607_v16  ;;  %v1682_v43 = vld [vmem:[#allocation3 + $0x3] ss:$0 sm:$0xff] }
  0x27   :  { %247 = vmatpush.bf16.msra.mxu1 %v1604_v6  ;;  %312 = vmatpush.bf16.msra.mxu2 %v1611_v17  ;;  %v1616_v6 = vld [vmem:[#allocation6 + $0x8] sm:$0xff] }
  0x29   :  { %v198_v7 = vld.sshfl [vmem:[#allocation1 + $0x8] sm:$0xff pattern:$0x73625140]  ;;  %392 = vmatpush.bf16.msrb.mxu0 %v1613_v15  ;;  %v505_v15 = vlaneseq }
  0x2a   :  { %256 = vst [vmem:[#allocation1] ss:$4 sm:$0xff] %v163_v3  ;;  %349 = vmatpush.bf16.msra.mxu3 %v1606_v19 }
  0x2b   :  { %248 = vmatpush.bf16.msra.mxu1 %v1603_v10  ;;  %313 = vmatpush.bf16.msra.mxu2 %v1610_v28  ;;  %v2132_v16 = vshrl.u32 %v505_v15, 7 }
  0x2d   :  { %1674 = vset.pattern.permute.xlu1 %v2132_v16  ;;  %1678 = vset.pattern.permute.xlu0 %v2132_v16 }
  0x2e   :  { %472 = vmatpush.bf16.msrb.mxu3 %v1616_v6 }
  0x2f   :  { %249 = vmatpush.bf16.msra.mxu1 %v1602_v11  ;;  %314 = vmatpush.bf16.msra.mxu2 %v1609_v29 }
  0x31   :  { %v257_v8 = vld.sshfl [vmem:[#allocation1 + $0x10] sm:$0xff pattern:$0x73625140] }
  0x32   :  { %267 = vst [vmem:[#allocation1] ss:$4 sm:$0xff] %v2069_v2 }
  0x34   :  { %1416 = vmatmul.msk.bf16.vlgmr.msrb.gmra.mxu0 %vm381_vm1, %v364_v18  ;;  %v164_v18 = vld [vmem:[%s2243_s2] sm:$0x3]  ;;  %s1948_s2 = smov 80  }
  0x35   :  { %v504_v19 = vperm.slane %v164_v18, 0 }
  0x39   :  { %v268_v9 = vld.sshfl [vmem:[#allocation1 + $0x8] sm:$0xff pattern:$0x73625140] }
  0x3a   :  { %436 = vst [vmem:[#allocation1] ss:$4 sm:$0xff] %v2064_v1  ;;  %v270_v27 = vpack.c.bf16 %v268_v9, %v268_v9 }
  0x3c   :  { %1407 = vmatmul.msk.bf16.vlgmr.msra.gmra.mxu3 %vm338_vm3, %v270_v27 }
  0x41   :  { %v437_v5 = vld.sshfl [vmem:[#allocation1] sm:$0xff pattern:$0x73625140] }
  0xa1   :  { %v191_v21 = vpop.f32.mrf.mxu0 }
  0xa2   :  { %v192_v22 = vadd.f32 %v1679_v20, %v191_v21  ;;  %v511_v20 = vperm.slane %v164_v18, 1  ;;  %v1629_v18 = vld [vmem:[#allocation9 + $0x44] sm:$0xf0] }
  0xa4   :  { %v195_v23 = vmax.f32 %v192_v22, 0.0  ;;  %v481_v22 = vld [vmem:[#allocation14] sm:$0xff] }
  0xa6   :  { %v200_v24 = vmul.f32 %v198_v7, %v195_v23  ;;  %v1615_v7 = vld [vmem:[#allocation6] sm:$0xff] }
  0xa7   :  { %473 = vmatpush.bf16.msrb.mxu3 %v1615_v7  ;;  %v1630_v7 = vld [vmem:[#allocation9 + $0x54] sm:$0xf] }
  0xa8   :  { %v209_v25 = vpack.c.bf16 %v200_v24, %v200_v24 }
  0xa9   :  { %v193_v26 = vpop.f32.mrf.mxu0 }
  0xaa   :  { %1377 = vmatmul.msk.bf16.vlgmr.msra.gmra.mxu1 %vm238_vm2, %v209_v25  ;;  %v482_v25 = vld [vmem:[#allocation14 + $0x8] sm:$0xff] }
  0xb1   :  { %v394_v31 = vpop.f32.mrf.mxu0 }
  0xb2   :  { %v395_v32 = vadd.f32 %v1681_v30, %v394_v31  ;;  %v1683_v30 = vld [vmem:[#allocation3 + $0x2] ss:$0 sm:$0xff] }
  0xb4   :  { %419 = vrot.lane.b32.xlu0 %v395_v32, %s1935_s16 }
  0xb9   :  { %v396_v33 = vpop.f32.mrf.mxu0 }
  0xbf   :  { %v351_v41 = vpop.f32.mrf.mxu3 }
  0xc7   :  { %v353_v42 = vpop.f32.mrf.mxu3 }
 0x126   :  { %v420_v59 = vpop.permute.xlu0 %419 }
 0x127   :  { %v251_v35 = vpop.f32.mrf.mxu1 }
 0x128   :  { %v252_v36 = vadd.f32 %v1680_v34, %v251_v35 }
 0x12a   :  { %v255_v37 = vmax.f32 %v252_v36, 0.0 }
 0x12c   :  { %v259_v38 = vmul.f32 %v257_v8, %v255_v37 }
 0x12e   :  { %v279_v39 = vpack.c.bf16 %v259_v38, %v259_v38 }
 0x12f   :  { %v253_v40 = vpop.f32.mrf.mxu1 }
 0x130   :  { %1394 = vmatmul.msk.bf16.vlgmr.msra.gmra.mxu2 %vm238_vm2, %v279_v39 }
 0x1b3   :  { %v316_v44 = vpop.f32.mrf.mxu2 }
 0x1b4   :  { %v352_v45 = vadd.f32 %v351_v41, %v316_v44 }
 0x1b6   :  { %v359_v46 = vadd.f32 %v1682_v43, %v352_v45  ;;  %v1947_v45 = vmov 0  }
 0x1b7   :  { %1676 = vset.pattern.permute.xlu2 %v1947_v45 }
 0x1b8   :  { %v398_v47 = vadd.f32 %v395_v32, %v359_v46 }
 0x1ba   :  { %v1417_v48 = vmul.f32 -1.442695, %v398_v47 }
 0x1bb   :  { %v318_v49 = vpop.f32.mrf.mxu2 }
 0x1bc   :  { %1686 = vpow2.f32 %v1417_v48 }
 0x1c2   :  { %v1687_v50 = vpop.eup %1686 }
 0x1c3   :  { %v402_v51 = vadd.f32 1.0, %v1687_v50  ;;  %v1469_v50 = vld [vmem:[#allocation9 + $0x70] sm:$0xf] }
 0x1c5   :  { %1688 = vrcp.f32 %v402_v51  ;;  %v414_v55 = vand.u32 2147483648, %v402_v51  ;;  %v412_v57 = vand.u32 2147483647, %v402_v51  ;;  %vm408_vm5 = vweird.f32 %v402_v51 }
 0x1c7   :  { %v415_v60 = vor.u32 1.1754944e-38, %v414_v55  ;;  %vm413_vm7 = vcmp.eq.f32.partialorder %v412_v57, 8.507059e+37  ;;  %v1461_v55 = vld [vmem:[#allocation9 + $0x60] sm:$0xf] }
 0x1cb   :  { %v1689_v52 = vpop.eup %1688 }
 0x1cc   :  { %v404_v53 = vmul.f32 %v1689_v52, %v402_v51  ;;  %vm409_vm4 = vweird.f32 %v1689_v52  ;;  %v1635_v51 = vld [vmem:[#allocation9 + $0x74] sm:$0xf0] }
 0x1cd   :  { %vm410_vm6 = vmor %vm408_vm5, %vm409_vm4  ;;  %vm1320_vm4 = vcmask 58368   ;;  %vm1288_vm5 = vcmask 254976  }
 0x1ce   :  { %v405_v54 = vsub.f32 1.0, %v404_v53  ;;  %v1470_v53 = vor.u32 %v1635_v51, %v1469_v50  ;;  %v1649_v50 = vld [vmem:[#allocation9 + $0xe4] sm:$0xf0] }
 0x1d0   :  { %v406_v56 = vmul.f32 %v1689_v52, %v405_v54  ;;  %v1471_v54 = vld [vmem:[#allocation9 + $0x78] sm:$0xf0]  ;;  %823 = vmatpush.bf16.msra.mxu0 %v1470_v53  ;;  %v1533_v53 = vld [vmem:[#allocation9 + $0xe8] sm:$0xf0] }
 0x1d2   :  { %v407_v58 = vadd.f32 %v1689_v52, %v406_v56  ;;  %v1633_v56 = vld [vmem:[#allocation9 + $0x64] sm:$0xf0] }
 0x1d4   :  { %v411_v61 = vsel %vm410_vm6, %v1689_v52, %v407_v58  ;;  %v1634_v52 = vld [vmem:[#allocation9 + $0x74] sm:$0xf]  ;;  %v1632_v58 = vld [vmem:[#allocation9 + $0x64] sm:$0xf]  ;;  %vm1311_vm6 = vcmask 1043459  }
 0x1d5   :  { %v416_v62 = vsel %vm413_vm7, %v415_v60, %v411_v61  ;;  %v1474_v57 = vor.u32 %v1634_v52, %v1471_v54  ;;  %v1462_v61 = vor.u32 %v1633_v56, %v1461_v55  ;;  %v1648_v52 = vld [vmem:[#allocation9 + $0xe4] sm:$0xf]  ;;  %v1523_v55 = vld [vmem:[#allocation9 + $0xd0] sm:$0xf]  ;;  %v1647_v56 = vld [vmem:[#allocation9 + $0xd4] sm:$0xf0] }
 0x1d6   :  { %v422_v63 = vmul.f32 %v420_v59, %v416_v62  ;;  %v429_v9 = vsub.f32 1.0, %v416_v62  ;;  %v1463_v59 = vld [vmem:[#allocation9 + $0x68] sm:$0xf0]  ;;  %v1536_v54 = vor.u32 %v1648_v52, %v1533_v53  ;;  %v1627_v52 = vld [vmem:[#allocation9 + $0x34] sm:$0xf0]  ;;  %vm1313_vm7 = vcmask 1045509  }
 0x1d7   :  { %836 = vmatpush.bf16.msra.mxu3 %v1474_v57  ;;  %824 = vmatpush.bf16.msra.mxu0 %v1462_v61  ;;  %v1646_v57 = vld [vmem:[#allocation9 + $0xd4] sm:$0xf]  ;;  %v1524_v61 = vor.u32 %v1647_v56, %v1523_v55  ;;  %v1505_v55 = vld [vmem:[#allocation9 + $0x38] sm:$0xf0]  ;;  %v1495_v56 = vld [vmem:[#allocation9 + $0x20] sm:$0xf] }
 0x1d8   :  { %424 = vrot.lane.b32.xlu0 %v422_v63, %s1935_s16  ;;  %v1466_v63 = vor.u32 %v1632_v58, %v1463_v59  ;;  %v1525_v58 = vld [vmem:[#allocation9 + $0xd8] sm:$0xf0]  ;;  %v1626_v53 = vld [vmem:[#allocation9 + $0x34] sm:$0xf] }
 0x1db   :  { %837 = vmatpush.bf16.msra.mxu3 %v1466_v63 }
 0x24a   :  { %v425_v0 = vpop.permute.xlu0 %424 }
 0x24b   :  { %v427_v3 = vadd.f32 %v425_v0, %v359_v46  ;;  %v1453_v0 = vld [vmem:[#allocation9 + $0x50] sm:$0xf] }
 0x24d   :  { %1690 = vtanh.f32 %v427_v3  ;;  %v1631_v3 = vld [vmem:[#allocation9 + $0x54] sm:$0xf0] }
 0x253   :  { %v1691_v4 = vpop.eup %1690 }
 0x254   :  { %431 = vrot.lane.b32.xlu1 %v1691_v4, %s1945_s5 }
 0x25c   :  { %438 = vrot.lane.b32.xlu1 %v437_v5, %s1946_s14 }
 0x264   :  { %509 = vperm.xlu1 %1674, %v504_v19  }
 0x26c   :  { %516 = vperm.xlu1 %1674, %v511_v20   ;;  %v1628_v20 = vld [vmem:[#allocation9 + $0x44] sm:$0xf] }
 0x274   :  { %1675 = vset.pattern.permute.xlu1 %v1947_v45 }
 0x2c6   :  { %v432_v8 = vpop.permute.xlu1 %431 }
 0x2c7   :  { %v434_v11 = vmul.f32 %v432_v8, %v429_v9  ;;  %v1455_v8 = vld [vmem:[#allocation9 + $0x58] sm:$0xf0] }
 0x2ce   :  { %v439_v10 = vpop.permute.xlu1 %438 }
 0x2cf   :  { %v441_v12 = vmul.f32 %v439_v10, %v416_v62  ;;  %v1454_v10 = vor.u32 %v1631_v3, %v1453_v0  ;;  %v1528_v3 = vor.u32 %v1646_v57, %v1525_v58  ;;  %v1625_v57 = vld [vmem:[#allocation9 + $0x24] sm:$0xf0]  ;;  %v1508_v58 = vor.u32 %v1626_v53, %v1505_v55 }
 0x2d1   :  { %v2126_v13 = vadd.f32 %v441_v12, %v434_v11  ;;  %825 = vmatpush.bf16.msra.mxu0 %v1454_v10 }
 0x2d3   :  { %v447_v14 = vpack.c.bf16 %v2126_v13, %v2126_v13 }
 0x2d5   :  { %449 = vrot.lane.b32.xlu2 %v447_v14, %s1945_s5  ;;  %v1458_v14 = vor.u32 %v1630_v7, %v1455_v8 }
 0x2d6   :  { %v510_v37 = vpop.permute.xlu1 %509 }
 0x2d7   :  { %838 = vmatpush.bf16.msra.mxu3 %v1458_v14 }
 0x2de   :  { %v517_v40 = vpop.permute.xlu1 %516 }
 0x32f   :  { %v450_v17 = vpop.permute.xlu2 %449 }
 0x330   :  { %1426 = vmatmul.msk.bf16.vlgmr.msrb.gmra.mxu3 %vm381_vm1, %v450_v17  ;;  %v1445_v17 = vld [vmem:[#allocation9 + $0x40] sm:$0xf] }
 0x3b3   :  { %v2140_v21 = vpop.f32.mrf.mxu3 }
 0x3b4   :  { %v480_v23 = vrot.slane %v2140_v21, 1  ;;  %v483_v24 = vperm.slane %v2140_v21, 0 }
 0x3b6   :  { %v484_v26 = vperm.slane %v480_v23, 0  ;;  %v487_v27 = vadd.f32 %v483_v24, %v481_v22  ;;  %v1447_v22 = vld [vmem:[#allocation9 + $0x48] sm:$0xf0] }
 0x3b8   :  { %v488_v28 = vadd.f32 %v484_v26, %v482_v25  ;;  %1692 = vtanh.f32 %v487_v27 }
 0x3ba   :  { %1694 = vtanh.f32 %v488_v28  ;;  %v1446_v28 = vor.u32 %v1629_v18, %v1445_v17 }
 0x3bb   :  { %v477_v29 = vpop.f32.mrf.mxu3 }
 0x3bc   :  { %826 = vmatpush.bf16.msra.mxu0 %v1446_v28  ;;  %v560_v28 = vrot.slane %v2069_v2, 4 }
 0x3be   :  { %v1693_v31 = vpop.eup %1692 }
 0x3bf   :  { %v495_v32 = vmul.f32 %v1693_v31, %v1683_v30 }
 0x3c0   :  { %v1695_v33 = vpop.eup %1694 }
 0x3c1   :  { %v497_v34 = vsel %vm381_vm1, %v495_v32, 0.0  ;;  %v496_v35 = vmul.f32 %v1695_v33, %v1683_v30  ;;  %v1450_v30 = vor.u32 %v1628_v20, %v1447_v22 }
 0x3c2   :  { %498 = vadd.xlane.f32.xlu2 %v497_v34 }
 0x3c3   :  { %v500_v36 = vsel %vm381_vm1, %v496_v35, 0.0  ;;  %839 = vmatpush.bf16.msra.mxu3 %v1450_v30  ;;  %vm640_vm1 = vcmask 64512  }
 0x3c4   :  { %501 = vadd.xlane.f32.xlu0 %v500_v36 }
 0x435   :  { %v499_v38 = vpop.xlane.xlu2 %498 }
 0x436   :  { %v520_v39 = vmul.f32 %v510_v37, %v499_v38  ;;  %v1539_v38 = vld [vmem:[#allocation9 + $0xf0] sm:$0xf] }
 0x437   :  { %v502_v41 = vpop.xlane.xlu0 %501 }
 0x438   :  { %v1427_v42 = vmul.f32 -1.442695, %v520_v39  ;;  %v521_v43 = vmul.f32 %v517_v40, %v502_v41  ;;  %v1651_v39 = vld [vmem:[#allocation9 + $0xf4] sm:$0xf0]  ;;  %v1650_v41 = vld [vmem:[#allocation9 + $0xf4] sm:$0xf] }
 0x439   :  { %v1540_v45 = vor.u32 %v1651_v39, %v1539_v38 }
 0x43a   :  { %1696 = vpow2.f32 %v1427_v42  ;;  %v1428_v44 = vmul.f32 -1.442695, %v521_v43 }
 0x43b   :  { %1048 = vmatpush.bf16.msrb.mxu0 %v1540_v45 }
 0x43c   :  { %1698 = vpow2.f32 %v1428_v44 }
 0x440   :  { %v1697_v46 = vpop.eup %1696 }
 0x441   :  { %v528_v47 = vadd.f32 1.0, %v1697_v46  ;;  %v1541_v46 = vld [vmem:[#allocation9 + $0xf8] sm:$0xf0] }
 0x442   :  { %v1699_v48 = vpop.eup %1698 }
 0x443   :  { %1700 = vrcp.f32 %v528_v47  ;;  %v2146_v49 = vadd.f32 1.0, %v1699_v48  ;;  %v541_v6 = vand.u32 2147483648, %v528_v47  ;;  %v539_v12 = vand.u32 2147483647, %v528_v47 }
 0x444   :  { %vm535_vm9 = vweird.f32 %v528_v47  ;;  %v1544_v48 = vor.u32 %v1650_v41, %v1541_v46 }
 0x445   :  { %1702 = vrcp.f32 %v2146_v49  ;;  %v542_v24 = vor.u32 1.1754944e-38, %v541_v6  ;;  %v556_v25 = vand.u32 2147483648, %v2146_v49  ;;  %v554_v27 = vand.u32 2147483647, %v2146_v49  ;;  %v1517_v6 = vld [vmem:[#allocation9 + $0xc8] sm:$0xf0] }
 0x446   :  { %vm540_vm12 = vcmp.eq.f32.partialorder %v539_v12, 8.507059e+37  ;;  %vm550_vm13 = vweird.f32 %v2146_v49  ;;  %1061 = vmatpush.bf16.msrb.mxu3 %v1544_v48  ;;  %v1619_v48 = vld [vmem:[#allocation8 + $0x10] sm:$0xff] }
 0x447   :  { %v557_v36 = vor.u32 1.1754944e-38, %v556_v25  ;;  %vm555_vm15 = vcmp.eq.f32.partialorder %v554_v27, 8.507059e+37  ;;  %v639_v25 = vld [vmem:[#allocation11] sm:$0xff]  ;;  %v594_v27 = vand.u32 127, %v505_v15  ;;  %737 = vmatpush.bf16.msrb.mxu2 %v1619_v48 }
 0x448   :  { %659 = vmatpush.msrb.mxu1 %v639_v25 }
 0x449   :  { %v1701_v60 = vpop.eup %1700 }
 0x44a   :  { %v531_v62 = vmul.f32 %v1701_v60, %v528_v47  ;;  %vm536_vm8 = vweird.f32 %v1701_v60  ;;  %1062 = vmatpush.bf16.msrb.mxu3 %v1536_v54 }
 0x44b   :  { %v1703_v4 = vpop.eup %1702  ;;  %vm537_vm10 = vmor %vm535_vm9, %vm536_vm8  ;;  %vm1315_vm8 = vcmask 1047559   ;;  %vm1318_vm9 = vcmask 386048  }
 0x44c   :  { %v532_v5 = vsub.f32 1.0, %v531_v62  ;;  %v546_v9 = vmul.f32 %v1703_v4, %v2146_v49  ;;  %vm551_vm11 = vweird.f32 %v1703_v4  ;;  %v1531_v49 = vld [vmem:[#allocation9 + $0xe0] sm:$0xf] }
 0x44d   :  { %vm552_vm14 = vmor %vm550_vm13, %vm551_vm11  ;;  %v1532_v51 = vor.u32 %v1649_v50, %v1531_v49  ;;  %v1515_v62 = vld [vmem:[#allocation9 + $0xc0] sm:$0xf]  ;;  %v1618_v49 = vld [vmem:[#allocation8 + $0x8] sm:$0xff] }
 0x44e   :  { %v533_v11 = vmul.f32 %v1701_v60, %v532_v5  ;;  %v547_v19 = vsub.f32 1.0, %v546_v9  ;;  %v1644_v5 = vld [vmem:[#allocation9 + $0xc4] sm:$0xf]  ;;  %1063 = vmatpush.bf16.msrb.mxu3 %v1528_v3  ;;  %738 = vmatpush.bf16.msrb.mxu2 %v1618_v49  ;;  %v1617_v50 = vld [vmem:[#allocation8] sm:$0xff] }
 0x44f   :  { %1049 = vmatpush.bf16.msrb.mxu0 %v1532_v51  ;;  %v1503_v51 = vld [vmem:[#allocation9 + $0x30] sm:$0xf] }
 0x450   :  { %v534_v23 = vadd.f32 %v1701_v60, %v533_v11  ;;  %v548_v26 = vmul.f32 %v1703_v4, %v547_v19  ;;  %v1520_v11 = vor.u32 %v1644_v5, %v1517_v6  ;;  %v1504_v54 = vor.u32 %v1627_v52, %v1503_v51 }
 0x452   :  { %v538_v29 = vsel %vm537_vm10, %v1701_v60, %v534_v23  ;;  %v549_v32 = vadd.f32 %v1703_v4, %v548_v26  ;;  %1064 = vmatpush.bf16.msrb.mxu3 %v1520_v11  ;;  %739 = vmatpush.bf16.msrb.mxu2 %v1617_v50 }
 0x453   :  { %v543_v31 = vsel %vm540_vm12, %v542_v24, %v538_v29  ;;  %1050 = vmatpush.bf16.msrb.mxu0 %v1524_v61  ;;  %892 = vmatpush.bf16.msra.mxu1 %v1504_v54  ;;  %v680_v61 = vld [vmem:[#allocation12 + $0x8] sm:$0xff] }
 0x454   :  { %v564_v33 = vrot.slane %v543_v31, 2  ;;  %v565_v34 = vrot.slane %v543_v31, 4  ;;  %v566_v35 = vrot.slane %v543_v31, 6  ;;  %570 = vst [vmem:[#allocation1] ss:$4 sm:$0xff] %v543_v31  ;;  %v553_v37 = vsel %vm552_vm14, %v1703_v4, %v549_v32 }
 0x455   :  { %v558_v40 = vsel %vm555_vm15, %v557_v36, %v553_v37  ;;  %v601_v47 = vsub.f32 1.0, %v543_v31  ;;  %v1645_v4 = vld [vmem:[#allocation9 + $0xc4] sm:$0xf0]  ;;  %v770_v54 = vld [vmem:[#allocation3 + $0x6] sm:$0x3] }
 0x456   :  { %572 = vst [vmem:[#allocation1 + $0x1] ss:$4 sm:$0xff] %v564_v33  ;;  %v567_v42 = vrot.slane %v558_v40, 2  ;;  %v568_v43 = vrot.slane %v558_v40, 4  ;;  %v569_v44 = vrot.slane %v558_v40, 6  ;;  %v602_v63 = vsub.f32 1.0, %v558_v40  ;;  %905 = vmatpush.bf16.msra.mxu2 %v1508_v58 }
 0x457   :  { %574 = vst [vmem:[#allocation1 + $0x2] ss:$4 sm:$0xff] %v565_v34  ;;  %v605_v59 = vrot.slane %v601_v47, 2  ;;  %v606_v60 = vrot.slane %v601_v47, 4  ;;  %v607_v7 = vrot.slane %v601_v47, 6  ;;  %v1516_v8 = vor.u32 %v1645_v4, %v1515_v62  ;;  %v679_v62 = vld [vmem:[#allocation12] sm:$0xff] }
 0x458   :  { %576 = vst [vmem:[#allocation1 + $0x3] ss:$4 sm:$0xff] %v566_v35  ;;  %v608_v10 = vrot.slane %v602_v63, 2  ;;  %v609_v12 = vrot.slane %v602_v63, 4  ;;  %v610_v14 = vrot.slane %v602_v63, 6  ;;  %v915_v55 = vperm.slane %v770_v54, 0 }
 0x459   :  { %579 = vst [vmem:[#allocation1 + $0x20] ss:$4 sm:$0xff] %v558_v40  ;;  %1051 = vmatpush.bf16.msrb.mxu0 %v1516_v8 }
 0x45a   :  { %581 = vst [vmem:[#allocation1 + $0x21] ss:$4 sm:$0xff] %v567_v42 }
 0x45b   :  { %583 = vst [vmem:[#allocation1 + $0x22] ss:$4 sm:$0xff] %v568_v43 }
 0x45c   :  { %585 = vst [vmem:[#allocation1 + $0x23] ss:$4 sm:$0xff] %v569_v44 }
 0x45f   :  { %v577_v0 = vld.sshfl [vmem:[#allocation1] sm:$0xff pattern:$0x73625140] }
 0x460   :  { %611 = vst [vmem:[#allocation1] ss:$4 sm:$0xff] %v601_v47 }
 0x461   :  { %613 = vst [vmem:[#allocation1 + $0x1] ss:$4 sm:$0xff] %v605_v59  ;;  %v1497_v59 = vld [vmem:[#allocation9 + $0x28] sm:$0xf0] }
 0x462   :  { %615 = vst [vmem:[#allocation1 + $0x2] ss:$4 sm:$0xff] %v606_v60 }
 0x463   :  { %v586_v9 = vld.sshfl [vmem:[#allocation1 + $0x20] sm:$0xff pattern:$0x73625140]  ;;  %617 = vst [vmem:[#allocation1 + $0x3] ss:$4 sm:$0xff] %v607_v7 }
 0x464   :  { %591 = vperm.xlu2 %1676, %v586_v9   ;;  %620 = vst [vmem:[#allocation1 + $0x20] ss:$4 sm:$0xff] %v602_v63 }
 0x465   :  { %622 = vst [vmem:[#allocation1 + $0x21] ss:$4 sm:$0xff] %v608_v10 }
 0x466   :  { %624 = vst [vmem:[#allocation1 + $0x22] ss:$4 sm:$0xff] %v609_v12 }
 0x467   :  { %626 = vst [vmem:[#allocation1 + $0x23] ss:$4 sm:$0xff] %v610_v14 }
 0x46a   :  { %v618_v17 = vld.sshfl [vmem:[#allocation1] sm:$0xff pattern:$0x73625140] }
 0x46b   :  { %629 = vperm.xlu1 %1675, %v618_v17   ;;  %772 = vst [vmem:[#allocation1] ss:$4 sm:$0xff] %v2064_v1 }
 0x46e   :  { %v627_v18 = vld.sshfl [vmem:[#allocation1 + $0x20] sm:$0xff pattern:$0x73625140] }
 0x472   :  { %v773_v19 = vld.sshfl [vmem:[#allocation1 + $0x8] sm:$0xff pattern:$0x73625140] }
 0x473   :  { %632 = vperm.xlu1 %1675, %v627_v18   ;;  %v775_v20 = vpack.c.bf16 %v773_v19, %v773_v19  ;;  %960 = vst [vmem:[#allocation1] ss:$4 sm:$0xff] %v2064_v1 }
 0x475   :  { %1475 = vmatmul.msk.bf16.vlgmr.msra.gmra.mxu0 %vm238_vm2, %v775_v20  ;;  %1476 = vmatmul.msk.bf16.vlgmr.msra.gmra.mxu3 %vm238_vm2, %v775_v20 }
 0x47a   :  { %v961_v22 = vld.sshfl [vmem:[#allocation1 + $0x18] sm:$0xff pattern:$0x73625140] }
 0x47b   :  { %997 = vst [vmem:[#allocation1] ss:$4 sm:$0xff] %v2064_v1  ;;  %588 = vperm.xlu1 %1675, %v577_v0  }
 0x482   :  { %v998_v23 = vld.sshfl [vmem:[#allocation1 + $0x10] sm:$0xff pattern:$0x73625140] }
 0x483   :  { %v1000_v24 = vpack.c.bf16 %v998_v23, %v998_v23  ;;  %1185 = vst [vmem:[#allocation1] ss:$4 sm:$0xff] %v2069_v2  ;;  %1677 = vset.pattern.permute.xlu1 %v2132_v16 }
 0x485   :  { %1545 = vmatmul.msk.bf16.vlgmr.msrb.gmra.mxu0 %vm238_vm2, %v1000_v24  ;;  %1546 = vmatmul.msk.bf16.vlgmr.msrb.gmra.mxu3 %vm238_vm2, %v1000_v24 }
 0x4be   :  { %v592_v16 = vpop.permute.xlu2 %591 }
 0x4bf   :  { %v596_v34 = vperm.slane %v592_v16, %v594_v27 }
 0x4dd   :  { %v630_v26 = vpop.permute.xlu1 %629 }
 0x4de   :  { %v634_v29 = vperm.slane %v630_v26, %v594_v27 }
 0x4e5   :  { %v633_v1 = vpop.permute.xlu1 %632 }
 0x4e6   :  { %v635_v30 = vperm.slane %v633_v1, %v594_v27 }
 0x4e8   :  { %v636_v31 = vsel %vm597_vm0, %v635_v30, %v634_v29 }
 0x4e9   :  { %v638_v32 = vmul.f32 %v636_v31, %v560_v28 }
 0x4eb   :  { %1429 = vmatmul.msk.f32.vlgmr.msrb.gmra.mxu1 %vm640_vm1, %v638_v32  ;;  %vm1290_vm1 = vcmask 517120  }
 0x4ed   :  { %v589_v33 = vpop.permute.xlu1 %588 }
 0x4ee   :  { %v595_v35 = vperm.slane %v589_v33, %v594_v27  ;;  %v1487_v33 = vld [vmem:[#allocation9 + $0x10] sm:$0xf] }
 0x4f0   :  { %v598_v36 = vsel %vm597_vm0, %v596_v34, %v595_v35  ;;  %v1623_v34 = vld [vmem:[#allocation9 + $0x14] sm:$0xf0]  ;;  %v1622_v35 = vld [vmem:[#allocation9 + $0x14] sm:$0xf] }
 0x4f1   :  { %v600_v37 = vmul.f32 %v598_v36, %v560_v28  ;;  %v1488_v36 = vor.u32 %v1623_v34, %v1487_v33  ;;  %v1639_v33 = vld [vmem:[#allocation9 + $0x94] sm:$0xf0]  ;;  %v1638_v34 = vld [vmem:[#allocation9 + $0x94] sm:$0xf] }
 0x4f2   :  { %v2167_v38 = vpop.f32.mrf.mxu0 }
 0x4f8   :  { %v2169_v15 = vpop.f32.mrf.mxu3 }
 0x4fa   :  { %v830_v2 = vpop.f32.mrf.mxu0 }
 0x500   :  { %v843_v39 = vpop.f32.mrf.mxu3 }
 0x501   :  { %v1479_v39 = vld [vmem:[#allocation9] sm:$0xf] }
 0x502   :  { %v2171_v40 = vpop.f32.mrf.mxu0 }
 0x508   :  { %v2173_v41 = vpop.f32.mrf.mxu3 }
 0x50a   :  { %v1055_v42 = vpop.f32.mrf.mxu0 }
 0x50b   :  { %v1621_v42 = vld [vmem:[#allocation9 + $0x4] sm:$0xf0] }
 0x510   :  { %v1068_v43 = vpop.f32.mrf.mxu3 }
 0x511   :  { %v1620_v43 = vld [vmem:[#allocation9 + $0x4] sm:$0xf] }
 0x568   :  { %v661_v44 = vpop.f32.mrf.mxu1 }
 0x569   :  { %v664_v45 = vadd.f32 %v661_v44, %v600_v37  ;;  %v1489_v37 = vld [vmem:[#allocation9 + $0x18] sm:$0xf0]  ;;  %v1480_v44 = vor.u32 %v1621_v42, %v1479_v39 }
 0x56a   :  { %v1492_v2 = vor.u32 %v1622_v35, %v1489_v37  ;;  %v1559_v35 = vld [vmem:[#allocation9 + $0x98] sm:$0xf0] }
 0x56b   :  { %1321 = vst.msk [vmem:[#allocation2 + $0xc] sm:$0x3] %vm1320_vm4, %v664_v45  ;;  %v672_v46 = vperm.slane %v664_v45, 1  ;;  %v665_v47 = vperm.slane %v664_v45, 0  ;;  %v1481_v45 = vld [vmem:[#allocation9 + $0x8] sm:$0xf0] }
 0x56d   :  { %677 = vperm.xlu0 %1678, %v672_v46   ;;  %670 = vperm.xlu1 %1677, %v665_v47   ;;  %v1484_v46 = vor.u32 %v1620_v43, %v1481_v45  ;;  %v1684_v47 = vld [vmem:[#allocation3 + $0x5] ss:$0 sm:$0xff] }
 0x575   :  { %1285 = vrot.lane.b32.xlu0 %v2126_v13, %s1945_s5  ;;  %745 = vrot.lane.b32.xlu1 %v2140_v21, %s1945_s5  ;;  %v1624_v13 = vld [vmem:[#allocation9 + $0x24] sm:$0xf]  ;;  %v1496_v21 = vor.u32 %v1625_v57, %v1495_v56 }
 0x576   :  { %v1500_v60 = vor.u32 %v1624_v13, %v1497_v59 }
 0x577   :  { %893 = vmatpush.bf16.msra.mxu1 %v1496_v21 }
 0x578   :  { %906 = vmatpush.bf16.msra.mxu2 %v1500_v60 }
 0x57b   :  { %894 = vmatpush.bf16.msra.mxu1 %v1488_v36 }
 0x57c   :  { %907 = vmatpush.bf16.msra.mxu2 %v1492_v2  ;;  %v1562_v2 = vor.u32 %v1638_v34, %v1559_v35 }
 0x57d   :  { %962 = vrot.lane.b32.xlu1 %v961_v22, %s1935_s16 }
 0x57f   :  { %895 = vmatpush.bf16.msra.mxu1 %v1480_v44 }
 0x580   :  { %908 = vmatpush.bf16.msra.mxu2 %v1484_v46 }
 0x5df   :  { %v678_v63 = vpop.permute.xlu0 %677  ;;  %v671_v0 = vpop.permute.xlu1 %670 }
 0x5e0   :  { %v682_v3 = vmul.f32 %v680_v61, %v678_v63  ;;  %v681_v4 = vmul.f32 %v679_v62, %v671_v0  ;;  %v916_v0 = vperm.slane %v770_v54, 1 }
 0x5e2   :  { %v690_v5 = vsel %vm338_vm3, %v682_v3, 0.0  ;;  %v683_v6 = vsel %vm338_vm3, %v681_v4, 0.0 }
 0x5e3   :  { %v691_v7 = vrot.slane %v690_v5, 4  ;;  %v684_v8 = vrot.slane %v683_v6, 4 }
 0x5e5   :  { %v692_v9 = vadd.f32 %v691_v7, %v690_v5  ;;  %v685_v10 = vadd.f32 %v684_v8, %v683_v6 }
 0x5e7   :  { %v693_v11 = vrot.slane %v692_v9, 2  ;;  %v686_v12 = vrot.slane %v685_v10, 2  ;;  %v1286_v14 = vpop.permute.xlu0 %1285  ;;  %v746_v48 = vpop.permute.xlu1 %745 }
 0x5e8   :  { %1289 = vst.msk [vmem:[#allocation2] sm:$0x3] %vm1288_vm5, %v1286_v14 }
 0x5e9   :  { %v694_v17 = vadd.f32 %v693_v11, %v692_v9  ;;  %v687_v18 = vadd.f32 %v686_v12, %v685_v10 }
 0x5eb   :  { %v695_v19 = vrot.slane %v694_v17, 1  ;;  %v688_v20 = vrot.slane %v687_v18, 1 }
 0x5ed   :  { %v696_v22 = vadd.f32 %v695_v19, %v694_v17  ;;  %v689_v23 = vadd.f32 %v688_v20, %v687_v18 }
 0x5ef   :  { %v704_v24 = vpack.c.bf16 %v696_v22, %v696_v22  ;;  %v1309_v25 = vrot.slane %v696_v22, 7  ;;  %v703_v26 = vpack.c.bf16 %v689_v23, %v689_v23  ;;  %v1573_v22 = vld [vmem:[#allocation9 + $0xb0] sm:$0xf]  ;;  %v963_v43 = vpop.permute.xlu1 %962 }
 0x5f1   :  { %v708_v27 = vunpack.c.l.b16 %v704_v24  ;;  %v707_v28 = vunpack.c.l.b16 %v703_v26  ;;  %v1310_v1 = vsel %vm597_vm0, %v1309_v25, %v689_v23  ;;  %v1643_v23 = vld [vmem:[#allocation9 + $0xb4] sm:$0xf0]  ;;  %v1642_v24 = vld [vmem:[#allocation9 + $0xb4] sm:$0xf]  ;;  %v1575_v26 = vld [vmem:[#allocation9 + $0xb8] sm:$0xf0] }
 0x5f2   :  { %v1312_v29 = vsel %vm1311_vm6, %v1309_v25, %v1310_v1  ;;  %v1578_v1 = vor.u32 %v1642_v24, %v1575_v26 }
 0x5f3   :  { %v1314_v30 = vsel %vm1313_vm7, %v1309_v25, %v1312_v29  ;;  %v709_v31 = vsel %vm597_vm0, %v708_v27, %v707_v28  ;;  %v1565_v27 = vld [vmem:[#allocation9 + $0xa0] sm:$0xf]  ;;  %v1641_v28 = vld [vmem:[#allocation9 + $0xa4] sm:$0xf0]  ;;  %v1640_v29 = vld [vmem:[#allocation9 + $0xa4] sm:$0xf] }
 0x5f4   :  { %v1316_v32 = vsel %vm1315_vm8, %v1309_v25, %v1314_v30  ;;  %v710_v16 = vpack.c.b16 %v709_v31, %v709_v31  ;;  %v1574_v25 = vor.u32 %v1643_v23, %v1573_v22  ;;  %v1567_v30 = vld [vmem:[#allocation9 + $0xa8] sm:$0xf0]  ;;  %v1566_v31 = vor.u32 %v1641_v28, %v1565_v27 }
 0x5f5   :  { %1319 = vst.msk [vmem:[#allocation2 + $0xa] sm:$0x3] %vm1318_vm9, %v1316_v32  ;;  %v1570_v32 = vor.u32 %v1640_v29, %v1567_v30 }
 0x5f6   :  { %1442 = vmatmul.msk.bf16.vlgmr.msrb.gmra.mxu2 %vm338_vm3, %v710_v16  ;;  %1117 = vmatpush.bf16.msrb.mxu1 %v1574_v25  ;;  %v1557_v16 = vld [vmem:[#allocation9 + $0x90] sm:$0xf] }
 0x5f7   :  { %1130 = vmatpush.bf16.msrb.mxu2 %v1578_v1  ;;  %v1558_v37 = vor.u32 %v1639_v33, %v1557_v16  ;;  %v1655_v16 = vld [vmem:[%s2250_s9 + $0x18] sm:$0xff] }
 0x5f8   :  { %1244 = vmatpush.bf16.msra.mxu0 %v1655_v16 }
 0x5fa   :  { %1118 = vmatpush.bf16.msrb.mxu1 %v1566_v31 }
 0x5fb   :  { %1131 = vmatpush.bf16.msrb.mxu2 %v1570_v32 }
 0x5fe   :  { %1119 = vmatpush.bf16.msrb.mxu1 %v1558_v37 }
 0x5ff   :  { %1132 = vmatpush.bf16.msrb.mxu2 %v1562_v2 }
 0x679   :  { %v2185_v49 = vpop.f32.mrf.mxu2 }
 0x67a   :  { %v748_v50 = vadd.f32 %v746_v48, %v2185_v49 }
 0x67c   :  { %v2188_v51 = vadd.f32 %v1684_v47, %v748_v50 }
 0x67e   :  { %v771_v52 = vpack.c.bf16 %v2188_v51, %v2188_v51 }
 0x680   :  { %1509 = vmatmul.msk.bf16.vlgmr.msra.gmra.mxu1 %vm238_vm2, %v771_v52  ;;  %1510 = vmatmul.msk.bf16.vlgmr.msra.gmra.mxu2 %vm238_vm2, %v771_v52 }
 0x681   :  { %v743_v53 = vpop.f32.mrf.mxu2 }
 0x6fd   :  { %v897_v56 = vpop.f32.mrf.mxu1 }
 0x6fe   :  { %v898_v57 = vadd.f32 %v897_v56, %v2167_v38 }
 0x700   :  { %v919_v58 = vadd.f32 %v915_v55, %v898_v57 }
 0x702   :  { %v1511_v13 = vmul.f32 -1.442695, %v919_v58  ;;  %v1549_v58 = vld [vmem:[#allocation9 + $0x80] sm:$0xf] }
 0x703   :  { %v910_v59 = vpop.f32.mrf.mxu2 }
 0x704   :  { %1704 = vpow2.f32 %v1511_v13  ;;  %v911_v63 = vadd.f32 %v910_v59, %v2169_v15  ;;  %v1186_v15 = vld.sshfl [vmem:[#allocation1] sm:$0xff pattern:$0x73625140]  ;;  %v1637_v13 = vld [vmem:[#allocation9 + $0x84] sm:$0xf0] }
 0x705   :  { %v899_v21 = vpop.f32.mrf.mxu1  ;;  %v1636_v59 = vld [vmem:[#allocation9 + $0x84] sm:$0xf] }
 0x706   :  { %v920_v4 = vadd.f32 %v916_v0, %v911_v63  ;;  %v1550_v21 = vor.u32 %v1637_v13, %v1549_v58 }
 0x708   :  { %v1512_v18 = vmul.f32 -1.442695, %v920_v4  ;;  %1120 = vmatpush.bf16.msrb.mxu1 %v1550_v21 }
 0x70a   :  { %v1705_v60 = vpop.eup %1704 }
 0x70b   :  { %v924_v61 = vadd.f32 1.0, %v1705_v60  ;;  %v912_v62 = vpop.f32.mrf.mxu2  ;;  %v1551_v60 = vld [vmem:[#allocation9 + $0x88] sm:$0xf0] }
 0x70d   :  { %1706 = vrcp.f32 %v924_v61  ;;  %v936_v7 = vand.u32 2147483648, %v924_v61  ;;  %v934_v38 = vand.u32 2147483647, %v924_v61  ;;  %vm930_vm10 = vweird.f32 %v924_v61 }
 0x70e   :  { %1708 = vtanh.f32 %v920_v4 }
 0x70f   :  { %v937_v10 = vor.u32 1.1754944e-38, %v936_v7  ;;  %vm935_vm12 = vcmp.eq.f32.partialorder %v934_v38, 8.507059e+37  ;;  %1710 = vpow2.f32 %v1512_v18 }
 0x713   :  { %v1707_v3 = vpop.eup %1706 }
 0x714   :  { %v926_v5 = vmul.f32 %v1707_v3, %v924_v61  ;;  %vm931_vm3 = vweird.f32 %v1707_v3  ;;  %v1709_v12 = vpop.eup %1708  ;;  %v1554_v61 = vor.u32 %v1636_v59, %v1551_v60 }
 0x715   :  { %vm932_vm11 = vmor %vm930_vm10, %vm931_vm3  ;;  %v1711_v19 = vpop.eup %1710 }
 0x716   :  { %v927_v6 = vsub.f32 1.0, %v926_v5  ;;  %v944_v20 = vadd.f32 1.0, %v1711_v19  ;;  %1133 = vmatpush.bf16.msrb.mxu2 %v1554_v61  ;;  %v157_v61 = vld [vmem:[%s2241_s0 + $0x10] sm:$0x3]  ;;  %s1950_s0 = smov 112  }
 0x717   :  { %160 = vst [vmem:[#allocation2 + $0x10] sm:$0x3] %v157_v61 }
 0x718   :  { %v928_v8 = vmul.f32 %v1707_v3, %v927_v6  ;;  %1712 = vrcp.f32 %v944_v20  ;;  %v956_v50 = vand.u32 2147483648, %v944_v20  ;;  %vm950_vm14 = vweird.f32 %v944_v20 }
 0x719   :  { %v954_v52 = vand.u32 2147483647, %v944_v20 }
 0x71a   :  { %v929_v9 = vadd.f32 %v1707_v3, %v928_v8  ;;  %v957_v54 = vor.u32 1.1754944e-38, %v956_v50 }
 0x71b   :  { %vm955_vm0 = vcmp.eq.f32.partialorder %v954_v52, 8.507059e+37 }
 0x71c   :  { %v933_v11 = vsel %vm932_vm11, %v1707_v3, %v929_v9  ;;  %v995_v3 = vld [vmem:[#allocation3 + $0x8] sm:$0x3]  ;;  %vm1322_vm11 = vcmask 123904  }
 0x71d   :  { %v938_v14 = vsel %vm935_vm12, %v937_v10, %v933_v11  ;;  %v1140_v4 = vperm.slane %v995_v3, 0 }
 0x71e   :  { %v966_v17 = vmul.f32 %v1709_v12, %v938_v14  ;;  %v1713_v36 = vpop.eup %1712  ;;  %v965_v45 = vmul.f32 %v963_v43, %v938_v14  ;;  %v1141_v14 = vperm.slane %v995_v3, 1 }
 0x71f   :  { %v946_v39 = vmul.f32 %v1713_v36, %v944_v20  ;;  %vm951_vm13 = vweird.f32 %v1713_v36 }
 0x720   :  { %968 = vrot.lane.b32.xlu2 %v966_v17, %s1935_s16  ;;  %vm952_vm15 = vmor %vm950_vm14, %vm951_vm13 }
 0x721   :  { %v947_v42 = vsub.f32 1.0, %v946_v39  ;;  %v1653_v39 = vld [vmem:[%s2250_s9 + $0x8] sm:$0xff] }
 0x723   :  { %v948_v44 = vmul.f32 %v1713_v36, %v947_v42 }
 0x725   :  { %v949_v48 = vadd.f32 %v1713_v36, %v948_v44 }
 0x727   :  { %v953_v53 = vsel %vm952_vm15, %v1713_v36, %v949_v48  ;;  %vm1328_vm15 = vcmask 1024  }
 0x728   :  { %1187 = vrot.lane.b32.xlu2 %v1186_v15, %s1935_s16  ;;  %v958_v56 = vsel %vm955_vm0, %v957_v54, %v953_v53  ;;  %v1685_v53 = vld [vmem:[#allocation3 + $0xa] ss:$0 sm:$0xff] }
 0x729   :  { %v1652_v54 = vld [vmem:[%s2250_s9] sm:$0xff] }
 0x77a   :  { %v969_v46 = vpop.permute.xlu2 %968 }
 0x77b   :  { %v2198_v47 = vadd.f32 %v969_v46, %v965_v45 }
 0x77d   :  { %1714 = vtanh.f32 %v2198_v47 }
 0x782   :  { %v1188_v33 = vpop.permute.xlu2 %1187 }
 0x783   :  { %v1715_v55 = vpop.eup %1714 }
 0x784   :  { %v973_v57 = vmul.f32 %v1715_v55, %v958_v56 }
 0x786   :  { %975 = vrot.lane.b32.xlu1 %v973_v57, %s1935_s16 }
 0x7f8   :  { %v976_v62 = vpop.permute.xlu1 %975 }
 0x7f9   :  { %v2203_v63 = vadd.f32 %v976_v62, %v2188_v51  ;;  %1291 = vst.msk [vmem:[#allocation2 + $0x2] sm:$0x3] %vm1290_vm1, %v976_v62 }
 0x7fb   :  { %v996_v0 = vpack.c.bf16 %v2203_v63, %v2203_v63 }
 0x7fd   :  { %1579 = vmatmul.msk.bf16.vlgmr.msrb.gmra.mxu1 %vm238_vm2, %v996_v0  ;;  %1580 = vmatmul.msk.bf16.vlgmr.msrb.gmra.mxu2 %vm238_vm2, %v996_v0 }
 0x87a   :  { %v1122_v5 = vpop.f32.mrf.mxu1 }
 0x87b   :  { %v1123_v6 = vadd.f32 %v1122_v5, %v2171_v40 }
 0x87d   :  { %v1144_v7 = vadd.f32 %v1140_v4, %v1123_v6 }
 0x87f   :  { %v1581_v8 = vmul.f32 -1.442695, %v1144_v7 }
 0x880   :  { %v1135_v38 = vpop.f32.mrf.mxu2 }
 0x881   :  { %1716 = vpow2.f32 %v1581_v8  ;;  %v1136_v12 = vadd.f32 %v1135_v38, %v2173_v41 }
 0x882   :  { %v1124_v51 = vpop.f32.mrf.mxu1 }
 0x883   :  { %v1145_v15 = vadd.f32 %v1141_v14, %v1136_v12 }
 0x885   :  { %v1582_v41 = vmul.f32 -1.442695, %v1145_v15 }
 0x887   :  { %v1717_v9 = vpop.eup %1716 }
 0x888   :  { %v1149_v10 = vadd.f32 1.0, %v1717_v9  ;;  %v1137_v11 = vpop.f32.mrf.mxu2 }
 0x88a   :  { %1718 = vrcp.f32 %v1149_v10  ;;  %v1161_v20 = vand.u32 2147483648, %v1149_v10  ;;  %v1159_v40 = vand.u32 2147483647, %v1149_v10  ;;  %vm1155_vm5 = vweird.f32 %v1149_v10 }
 0x88b   :  { %1720 = vtanh.f32 %v1145_v15 }
 0x88c   :  { %v1162_v24 = vor.u32 1.1754944e-38, %v1161_v20  ;;  %vm1160_vm7 = vcmp.eq.f32.partialorder %v1159_v40, 8.507059e+37  ;;  %1722 = vpow2.f32 %v1582_v41 }
 0x890   :  { %v1719_v17 = vpop.eup %1718 }
 0x891   :  { %v1151_v18 = vmul.f32 %v1719_v17, %v1149_v10  ;;  %vm1156_vm4 = vweird.f32 %v1719_v17  ;;  %v1721_v26 = vpop.eup %1720 }
 0x892   :  { %vm1157_vm6 = vmor %vm1155_vm5, %vm1156_vm4  ;;  %v1723_v1 = vpop.eup %1722 }
 0x893   :  { %v1152_v19 = vsub.f32 1.0, %v1151_v18  ;;  %v1169_v29 = vadd.f32 1.0, %v1723_v1 }
 0x895   :  { %v1153_v22 = vmul.f32 %v1719_v17, %v1152_v19  ;;  %1724 = vrcp.f32 %v1169_v29  ;;  %v1181_v42 = vand.u32 2147483648, %v1169_v29  ;;  %vm1175_vm9 = vweird.f32 %v1169_v29 }
 0x896   :  { %v1179_v43 = vand.u32 2147483647, %v1169_v29 }
 0x897   :  { %v1154_v23 = vadd.f32 %v1719_v17, %v1153_v22  ;;  %v1182_v45 = vor.u32 1.1754944e-38, %v1181_v42 }
 0x898   :  { %vm1180_vm10 = vcmp.eq.f32.partialorder %v1179_v43, 8.507059e+37 }
 0x899   :  { %v1158_v25 = vsel %vm1157_vm6, %v1719_v17, %v1154_v23 }
 0x89a   :  { %v1163_v27 = vsel %vm1160_vm7, %v1162_v24, %v1158_v25 }
 0x89b   :  { %v1191_v28 = vmul.f32 %v1721_v26, %v1163_v27  ;;  %v1725_v30 = vpop.eup %1724  ;;  %v1190_v35 = vmul.f32 %v1188_v33, %v1163_v27 }
 0x89c   :  { %v1171_v31 = vmul.f32 %v1725_v30, %v1169_v29  ;;  %vm1176_vm8 = vweird.f32 %v1725_v30 }
 0x89d   :  { %1193 = vrot.lane.b32.xlu1 %v1191_v28, %s1935_s16  ;;  %vm1177_vm3 = vmor %vm1175_vm9, %vm1176_vm8 }
 0x89e   :  { %v1172_v32 = vsub.f32 1.0, %v1171_v31 }
 0x8a0   :  { %v1173_v34 = vmul.f32 %v1725_v30, %v1172_v32 }
 0x8a2   :  { %v1174_v2 = vadd.f32 %v1725_v30, %v1173_v34 }
 0x8a4   :  { %v1178_v44 = vsel %vm1177_vm3, %v1725_v30, %v1174_v2 }
 0x8a5   :  { %1254 = vrot.lane.b32.xlu1 %v2185_v49, %s1948_s2  ;;  %v1654_v49 = vld [vmem:[%s2250_s9 + $0x10] sm:$0xff]  ;;  %v1183_v48 = vsel %vm1180_vm10, %v1182_v45, %v1178_v44 }
 0x8a6   :  { %1245 = vmatpush.bf16.msra.mxu0 %v1654_v49 }
 0x8aa   :  { %1246 = vmatpush.bf16.msra.mxu0 %v1653_v39 }
 0x8ad   :  { %1294 = vrot.lane.b32.xlu1 %v2198_v47, %s1935_s16 }
 0x8ae   :  { %1247 = vmatpush.bf16.msra.mxu0 %v1652_v54 }
 0x90f   :  { %v1194_v36 = vpop.permute.xlu1 %1193 }
 0x910   :  { %v1196_v37 = vadd.f32 %v1194_v36, %v1190_v35 }
 0x912   :  { %1726 = vtanh.f32 %v1196_v37 }
 0x917   :  { %v1255_v46 = vpop.permute.xlu1 %1254 }
 0x918   :  { %v1727_v47 = vpop.eup %1726 }
 0x919   :  { %v1198_v50 = vmul.f32 %v1727_v47, %v1183_v48 }
 0x91b   :  { %1200 = vrot.lane.b32.xlu2 %v1198_v50, %s1935_s16 }
 0x91f   :  { %v1295_v52 = vpop.permute.xlu1 %1294 }
 0x920   :  { %1297 = vst.msk [vmem:[#allocation2 + $0x6] sm:$0x3] %vm1290_vm1, %v1295_v52 }
 0x923   :  { %1261 = vrot.lane.b32.xlu2 %v1685_v53, %s1949_s8 }
 0x92b   :  { %1299 = vrot.lane.b32.xlu2 %v1196_v37, %s1935_s16 }
 0x975   :  { %v1201_v55 = vpop.permute.xlu2 %1200 }
 0x976   :  { %v1203_v56 = vadd.f32 %v1201_v55, %v2203_v63  ;;  %1292 = vst.msk [vmem:[#allocation2 + $0x4] sm:$0x3] %vm1290_vm1, %v1201_v55 }
 0x978   :  { %v1212_v57 = vpack.c.bf16 %v1203_v56, %v1203_v56 }
 0x97a   :  { %1599 = vmatmul.msk.bf16.vlgmr.msra.gmra.mxu0 %vm238_vm2, %v1212_v57 }
 0x97d   :  { %v1262_v58 = vpop.permute.xlu2 %1261  ;;  %v1330_v13 = vld [vmem:[#allocation2] sm:$0xff] }
 0x97e   :  { %1333 = vst [vmem:[#allocation15] sm:$0xff] %v1330_v13 }
 0x985   :  { %v1300_v59 = vpop.permute.xlu2 %1299 }
 0x986   :  { %1302 = vst.msk [vmem:[#allocation2 + $0x8] sm:$0x3] %vm1290_vm1, %v1300_v59 }
 0x9f7   :  { %v1249_v21 = vpop.f32.mrf.mxu0 }
 0x9f8   :  { %v1257_v60 = vadd.f32 %v1255_v46, %v1249_v21  ;;  %1323 = vst.msk [vmem:[#allocation2 + $0xe] sm:$0x3] %vm1322_vm11, %v1249_v21 }
 0x9fa   :  { %v1264_v62 = vadd.f32 %v1262_v58, %v1257_v60 }
 0x9fc   :  { %v1600_v63 = vmul.f32 -1.442695, %v1264_v62 }
 0x9fe   :  { %1728 = vpow2.f32 %v1600_v63 }
 0x9ff   :  { %v1251_v0 = vpop.f32.mrf.mxu0  ;;  %v1331_v3 = vld [vmem:[#allocation2 + $0x8] sm:$0xff] }
 0xa00   :  { %1334 = vst [vmem:[#allocation15 + $0x8] sm:$0xff] %v1331_v3 }
 0xa04   :  { %v1729_v4 = vpop.eup %1728 }
 0xa05   :  { %v1268_v5 = vadd.f32 1.0, %v1729_v4 }
 0xa07   :  { %1730 = vrcp.f32 %v1268_v5  ;;  %v1280_v38 = vand.u32 2147483648, %v1268_v5  ;;  %v1278_v9 = vand.u32 2147483647, %v1268_v5  ;;  %vm1274_vm12 = vweird.f32 %v1268_v5 }
 0xa09   :  { %v1281_v11 = vor.u32 1.1754944e-38, %v1280_v38  ;;  %vm1279_vm14 = vcmp.eq.f32.partialorder %v1278_v9, 8.507059e+37 }
 0xa0d   :  { %v1731_v6 = vpop.eup %1730 }
 0xa0e   :  { %v1270_v7 = vmul.f32 %v1731_v6, %v1268_v5  ;;  %vm1275_vm2 = vweird.f32 %v1731_v6 }
 0xa0f   :  { %vm1276_vm13 = vmor %vm1274_vm12, %vm1275_vm2 }
 0xa10   :  { %v1271_v8 = vsub.f32 1.0, %v1270_v7 }
 0xa12   :  { %v1272_v51 = vmul.f32 %v1731_v6, %v1271_v8 }
 0xa14   :  { %v1273_v10 = vadd.f32 %v1731_v6, %v1272_v51 }
 0xa16   :  { %v1277_v12 = vsel %vm1276_vm13, %v1731_v6, %v1273_v10 }
 0xa17   :  { %v1282_v14 = vsel %vm1279_vm14, %v1281_v11, %v1277_v12 }
 0xa18   :  { %1325 = vrot.lane.b32.xlu0 %v1282_v14, %s1950_s0 }
 0xa8a   :  { %v1326_v17 = vpop.permute.xlu0 %1325 }
 0xa8b   :  { %1329 = vst.msk [vmem:[#allocation2 + $0x10] sm:$0x3] %vm1328_vm15, %v1326_v17 }
 0xa92   :  { %v1332_v15 = vld [vmem:[#allocation2 + $0x10] sm:$0x3] }
 0xa93   :  { %1335 = vst [vmem:[#allocation15 + $0x10] sm:$0x3] %v1332_v15 }
 0xa94   :  { %1346 = dma.vmem_to_hbm [thread:$0]  %s1342_s25, 288, %s1344_s10, [#allocation5]  }
 0xa95   :  { %1932 = dma.done.wait [#allocation5], 288  }
 0xa96   :  { %1933 = vsyncadd [#allocation5], 4294967008 }
 0xa97   :  { %1351 = vsyncpa [#allocation4], 1 }
 0xa98   :  { %1352 = vsyncpa [#allocation7], 1 }
 0xa99   :  { %1353 = vsyncpa [#allocation10], 1 }
 0xa9a   :  { %1354 = vsyncpa [#allocation13], 1 }
 0xa9b   :  { %1355 = vsyncpa [#allocation5], 1 }

</bundles_post_ra>
